<compile_context>
chip_gen: v6e
topology: v6e:2x2x1
jax: 0.10.0
libtpu: 0.0.40
codegen_flags: <defaults>
</compile_context>

<pallas_src>
import functools

import jax
import jax.numpy as jnp
from jax.experimental import pallas as pl
from jax.experimental.pallas import tpu as pltpu

NUM_CLASSES = 6
SMOOTHING = 0.2
IGNORE_INDEX = -1

NL = 512            # lanes per grid step (batch rows spread across lanes)
MAX_TS = 256        # max sublanes per grid step -> 256*512 = 128K rows/step
SUBLANE_ALIGN = 16  # multiple-of-16 sublanes keeps bf16 (16,128) packing legal


def _cdiv(a, b):
    return -(-a // b)


def _round_up(a, m):
    return _cdiv(a, m) * m


def _ce_ls_mc_kernel(params_ref, logits_ref, target_ref, out_ref, *,
                     num_classes, ignore_index):
    """One grid step over TS*NL batch rows, class-major logits.

    params_ref: SMEM [2, C] f32; row0 = new_smoothing/C, row1 = 1 - new_smoothing
    logits_ref: VMEM [C, TS, NL] (native dtype; cast to f32 per class, in-register)
    target_ref: VMEM [TS, NL] int32
    out_ref:    VMEM [1, 8, 128] f32; sublane 0 = tile loss sum, sublanes 1.. = valid count
    """
    tgt = target_ref[...]                      # [TS, NL]
    valid = tgt != ignore_index                # [TS, NL] bool

    def xc(c):
        # Per-class load + cast; avoids materializing a full [C,TS,NL] f32 temp.
        return logits_ref[c].astype(jnp.float32)

    # Row-wise max over the small leading class axis: static unroll -> VPU only.
    m = xc(0)
    for c in range(1, num_classes):
        m = jnp.maximum(m, xc(c))

    # log-sum-exp over classes (exp on EUP, adds on VPU).
    denom = jnp.exp(xc(0) - m)
    for c in range(1, num_classes):
        denom = denom + jnp.exp(xc(c) - m)
    lse = m + jnp.log(denom)                   # [TS, NL]

    # loss_row = -sum_c smooth_label_c * log_softmax_c, unrolled over classes.
    # smooth_label_c = new_smoothing[c]/C + one_hot_c * (1 - new_smoothing[c])
    loss = jnp.zeros_like(m)
    for c in range(num_classes):
        addend = params_ref[0, c]              # scalar SMEM reads
        comp = params_ref[1, c]
        smooth_label = addend + jnp.where(tgt == c, comp, jnp.float32(0.0))
        loss = loss + smooth_label * (lse - xc(c))   # (lse - x) = -log_softmax

    loss = jnp.where(valid, loss, 0.0)

    tile_sum = jnp.sum(loss)
    tile_cnt = jnp.sum(valid.astype(jnp.float32))

    # Single lane-dense (1,8,128) partial block -> one unmasked store per step.
    row = jax.lax.broadcasted_iota(jnp.int32, out_ref.shape[1:], 0)
    out_ref[0] = jnp.where(row == 0, tile_sum, tile_cnt)


def _tile_plan(n, max_ts):
    """nl is fixed at NL=512; ts is balanced across tiles and 16-aligned."""
    ns_needed = _cdiv(n, NL)                   # sublane-rows needed
    num_tiles = _cdiv(ns_needed, max_ts)
    if num_tiles > 1 and num_tiles % 2:
        num_tiles += 1                         # even count -> balanced on v7x's 2 TCs
    ts = _round_up(_cdiv(ns_needed, num_tiles), SUBLANE_ALIGN)
    return num_tiles, ts


def ce_ls_mc(logits, target, conf_score, *, smoothing=SMOOTHING,
             num_classes=NUM_CLASSES, ignore_index=IGNORE_INDEX,
             class_major=False, max_ts=MAX_TS):
    """Pallas equivalent of CE_LS_MC.forward(logits, target, conf_score).

    logits: [N, C] (default) or [C, N] if class_major=True (fast path: no
    wrapper transpose; zero-copy when N is already a multiple of the tile extent).
    """
    if class_major:
        c, n = logits.shape
    else:
        n, c = logits.shape
    assert c == num_classes
    assert conf_score.shape[-1] == num_classes

    num_tiles, ts = _tile_plan(n, max_ts)
    ns_total = num_tiles * ts
    n_pad = ns_total * NL
    pad = n_pad - n

    if class_major:
        # [C, N] -> [C, NS, NL]; the reshape is free (row-major), pad only if needed.
        logits_cm = logits if pad == 0 else jnp.pad(logits, ((0, 0), (0, pad)))
        logits_cm = logits_cm.reshape(num_classes, ns_total, NL)
    else:
        # TODO(synk): have callers supply class-major [C, N] logits to drop this
        # transpose (it is an extra full read+write of the dominant input).
        logits_p = logits if pad == 0 else jnp.pad(logits, ((0, pad), (0, 0)))
        logits_cm = jnp.transpose(logits_p).reshape(num_classes, ns_total, NL)

    target_p = target.astype(jnp.int32)
    if pad:
        target_p = jnp.pad(target_p, (0, pad), constant_values=ignore_index)
    target_p = target_p.reshape(ns_total, NL)

    # Per-class smoothing constants (PyTorch computes these under no_grad).
    new_smoothing = smoothing + conf_score.astype(jnp.float32) / 100.0
    params = jnp.stack([new_smoothing / num_classes, 1.0 - new_smoothing])  # [2, C]

    kernel = functools.partial(_ce_ls_mc_kernel, num_classes=num_classes,
                               ignore_index=ignore_index)

    partials = pl.pallas_call(
        kernel,
        grid=(num_tiles,),
        in_specs=[
            pl.BlockSpec(memory_space=pltpu.MemorySpace.SMEM),            # params
            pl.BlockSpec((num_classes, ts, NL), lambda i: (0, i, 0)),     # logits (class-major)
            pl.BlockSpec((ts, NL), lambda i: (i, 0)),                     # targets
        ],
        out_specs=pl.BlockSpec((1, 8, 128), lambda i: (i, 0, 0)),         # per-tile partials
        out_shape=jax.ShapeDtypeStruct((num_tiles, 8, 128), jnp.float32),
        compiler_params=pltpu.CompilerParams(
            dimension_semantics=("parallel",),       # independent tiles -> both TCs on v7x
            vmem_limit_bytes=32 * 1024 * 1024),      # covers double-buffered 256x512 tiles
    )(params, logits_cm, target_p)

    total = jnp.sum(partials[:, 0, 0])
    # Per-tile counts are exact integers (< 2^17); reduce them exactly in int32.
    count = jnp.sum(partials[:, 1, 0].astype(jnp.int32))
    # Single global divide (NaN only if every target is ignored, like torch).
    return total / count.astype(jnp.float32)


def ce_ls_mc_ref(logits, target, conf_score, *, smoothing=SMOOTHING,
                 num_classes=NUM_CLASSES, ignore_index=IGNORE_INDEX):
    """Pure-JAX reference mirroring the PyTorch forward exactly."""
    new_smoothing = smoothing + conf_score / 100.0
    new_complement = 1.0 - new_smoothing
    oh = jax.nn.one_hot(target, num_classes, dtype=jnp.float32)
    smooth_labels = oh * new_complement[None, :] + new_smoothing[None, :] / num_classes
    mask = target != ignore_index
    logs = jax.nn.log_softmax(logits.astype(jnp.float32), axis=1)
    per_row = -jnp.sum(logs * smooth_labels, axis=1)
    return jnp.sum(jnp.where(mask, per_row, 0.0)) / jnp.sum(mask.astype(jnp.float32))


if __name__ == "__main__":
    key = jax.random.PRNGKey(0)
    c = NUM_CLASSES
    conf_score = jnp.array([0.8167, 0.8399, 0.8422, 0.8287, 0.7249, 0.84],
                           dtype=jnp.float32)
    k1, k2, k3, k4 = jax.random.split(key, 4)

    # Case 1: tiny batch (single tile), one ignored row, standard [N, C] layout.
    n1 = 8
    logits1 = jax.random.normal(k1, (n1, c), dtype=jnp.float32)
    target1 = jnp.array([0, 3, 5, 1, -1, 2, 4, 0], dtype=jnp.int32)
    out1 = jax.block_until_ready(ce_ls_mc(logits1, target1, conf_score))
    ref1 = ce_ls_mc_ref(logits1, target1, conf_score)
    assert jnp.allclose(out1, ref1, atol=1e-4, rtol=1e-4), (out1, ref1)

    # Case 2: multi-tile grid path (small max_ts forces 4 grid steps) with
    # padding and randomly ignored rows.
    n2 = 20000
    logits2 = jax.random.normal(k2, (n2, c), dtype=jnp.float32)
    target2 = jax.random.randint(k3, (n2,), -1, c, dtype=jnp.int32)  # includes -1
    out2 = jax.block_until_ready(ce_ls_mc(logits2, target2, conf_score, max_ts=16))
    ref2 = ce_ls_mc_ref(logits2, target2, conf_score)
    assert jnp.allclose(out2, ref2, atol=1e-4, rtol=1e-4), (out2, ref2)

    # Case 3: class-major bf16 fast path (no wrapper transpose, in-kernel cast).
    n3 = 3000
    logits3 = jax.random.normal(k4, (n3, c), dtype=jnp.float32).astype(jnp.bfloat16)
    target3 = jax.random.randint(k3, (n3,), -1, c, dtype=jnp.int32)
    out3 = jax.block_until_ready(
        ce_ls_mc(logits3.T, target3, conf_score, class_major=True))
    ref3 = ce_ls_mc_ref(logits3.astype(jnp.float32), target3, conf_score)
    assert jnp.allclose(out3, ref3, atol=1e-3, rtol=1e-3), (out3, ref3)

    print("KERNEL_OK")
</pallas_src>

<mosaic_0001>
module attributes {stable_mosaic.version = 11 : i64} {
  func.func @_ce_ls_mc_kernel(%arg0: i32, %arg1: memref<2x6xf32, #tpu.memory_space<smem>>, %arg2: memref<6x16x512xf32, #tpu.memory_space<vmem>>, %arg3: memref<16x512xi32, #tpu.memory_space<vmem>>, %arg4: memref<1x8x128xf32, #tpu.memory_space<vmem>>) attributes {dimension_semantics = [#tpu.dimension_semantics<parallel>], iteration_bounds = array<i64: 1>, scalar_prefetch = 0 : i64, scratch_operands = 0 : i64, tpu.core_type = #tpu.core_type<tc>, window_params = [{transform_indices = @transform_0, window_bounds = array<i64: 2, 6>}, {transform_indices = @transform_1, window_bounds = array<i64: 6, 16, 512>}, {transform_indices = @transform_2, window_bounds = array<i64: 16, 512>}, {transform_indices = @transform_3, window_bounds = array<i64: 1, 8, 128>}]} {
    %c0 = arith.constant 0 : index
    %c0_0 = arith.constant 0 : index
    %0 = vector.load %arg3[%c0, %c0_0] : memref<16x512xi32, #tpu.memory_space<vmem>>, vector<16x512xi32>
    %c-1_i32 = arith.constant -1 : i32
    %1 = vector.broadcast %c-1_i32 : i32 to vector<16x512xi32>
    %2 = arith.cmpi ne, %0, %1 : vector<16x512xi32>
    %c0_1 = arith.constant 0 : index
    %c0_2 = arith.constant 0 : index
    %c0_3 = arith.constant 0 : index
    %3 = vector.load %arg2[%c0_1, %c0_2, %c0_3] : memref<6x16x512xf32, #tpu.memory_space<vmem>>, vector<1x16x512xf32>
    %4 = vector.shape_cast %3 : vector<1x16x512xf32> to vector<16x512xf32>
    %c1 = arith.constant 1 : index
    %c0_4 = arith.constant 0 : index
    %c0_5 = arith.constant 0 : index
    %5 = vector.load %arg2[%c1, %c0_4, %c0_5] : memref<6x16x512xf32, #tpu.memory_space<vmem>>, vector<1x16x512xf32>
    %6 = vector.shape_cast %5 : vector<1x16x512xf32> to vector<16x512xf32>
    %7 = arith.maximumf %4, %6 : vector<16x512xf32>
    %c2 = arith.constant 2 : index
    %c0_6 = arith.constant 0 : index
    %c0_7 = arith.constant 0 : index
    %8 = vector.load %arg2[%c2, %c0_6, %c0_7] : memref<6x16x512xf32, #tpu.memory_space<vmem>>, vector<1x16x512xf32>
    %9 = vector.shape_cast %8 : vector<1x16x512xf32> to vector<16x512xf32>
    %10 = arith.maximumf %7, %9 : vector<16x512xf32>
    %c3 = arith.constant 3 : index
    %c0_8 = arith.constant 0 : index
    %c0_9 = arith.constant 0 : index
    %11 = vector.load %arg2[%c3, %c0_8, %c0_9] : memref<6x16x512xf32, #tpu.memory_space<vmem>>, vector<1x16x512xf32>
    %12 = vector.shape_cast %11 : vector<1x16x512xf32> to vector<16x512xf32>
    %13 = arith.maximumf %10, %12 : vector<16x512xf32>
    %c4 = arith.constant 4 : index
    %c0_10 = arith.constant 0 : index
    %c0_11 = arith.constant 0 : index
    %14 = vector.load %arg2[%c4, %c0_10, %c0_11] : memref<6x16x512xf32, #tpu.memory_space<vmem>>, vector<1x16x512xf32>
    %15 = vector.shape_cast %14 : vector<1x16x512xf32> to vector<16x512xf32>
    %16 = arith.maximumf %13, %15 : vector<16x512xf32>
    %c5 = arith.constant 5 : index
    %c0_12 = arith.constant 0 : index
    %c0_13 = arith.constant 0 : index
    %17 = vector.load %arg2[%c5, %c0_12, %c0_13] : memref<6x16x512xf32, #tpu.memory_space<vmem>>, vector<1x16x512xf32>
    %18 = vector.shape_cast %17 : vector<1x16x512xf32> to vector<16x512xf32>
    %19 = arith.maximumf %16, %18 : vector<16x512xf32>
    %c0_14 = arith.constant 0 : index
    %c0_15 = arith.constant 0 : index
    %c0_16 = arith.constant 0 : index
    %20 = vector.load %arg2[%c0_14, %c0_15, %c0_16] : memref<6x16x512xf32, #tpu.memory_space<vmem>>, vector<1x16x512xf32>
    %21 = vector.shape_cast %20 : vector<1x16x512xf32> to vector<16x512xf32>
    %22 = arith.subf %21, %19 : vector<16x512xf32>
    %23 = math.exp %22 : vector<16x512xf32>
    %c1_17 = arith.constant 1 : index
    %c0_18 = arith.constant 0 : index
    %c0_19 = arith.constant 0 : index
    %24 = vector.load %arg2[%c1_17, %c0_18, %c0_19] : memref<6x16x512xf32, #tpu.memory_space<vmem>>, vector<1x16x512xf32>
    %25 = vector.shape_cast %24 : vector<1x16x512xf32> to vector<16x512xf32>
    %26 = arith.subf %25, %19 : vector<16x512xf32>
    %27 = math.exp %26 : vector<16x512xf32>
    %28 = arith.addf %23, %27 : vector<16x512xf32>
    %c2_20 = arith.constant 2 : index
    %c0_21 = arith.constant 0 : index
    %c0_22 = arith.constant 0 : index
    %29 = vector.load %arg2[%c2_20, %c0_21, %c0_22] : memref<6x16x512xf32, #tpu.memory_space<vmem>>, vector<1x16x512xf32>
    %30 = vector.shape_cast %29 : vector<1x16x512xf32> to vector<16x512xf32>
    %31 = arith.subf %30, %19 : vector<16x512xf32>
    %32 = math.exp %31 : vector<16x512xf32>
    %33 = arith.addf %28, %32 : vector<16x512xf32>
    %c3_23 = arith.constant 3 : index
    %c0_24 = arith.constant 0 : index
    %c0_25 = arith.constant 0 : index
    %34 = vector.load %arg2[%c3_23, %c0_24, %c0_25] : memref<6x16x512xf32, #tpu.memory_space<vmem>>, vector<1x16x512xf32>
    %35 = vector.shape_cast %34 : vector<1x16x512xf32> to vector<16x512xf32>
    %36 = arith.subf %35, %19 : vector<16x512xf32>
    %37 = math.exp %36 : vector<16x512xf32>
    %38 = arith.addf %33, %37 : vector<16x512xf32>
    %c4_26 = arith.constant 4 : index
    %c0_27 = arith.constant 0 : index
    %c0_28 = arith.constant 0 : index
    %39 = vector.load %arg2[%c4_26, %c0_27, %c0_28] : memref<6x16x512xf32, #tpu.memory_space<vmem>>, vector<1x16x512xf32>
    %40 = vector.shape_cast %39 : vector<1x16x512xf32> to vector<16x512xf32>
    %41 = arith.subf %40, %19 : vector<16x512xf32>
    %42 = math.exp %41 : vector<16x512xf32>
    %43 = arith.addf %38, %42 : vector<16x512xf32>
    %c5_29 = arith.constant 5 : index
    %c0_30 = arith.constant 0 : index
    %c0_31 = arith.constant 0 : index
    %44 = vector.load %arg2[%c5_29, %c0_30, %c0_31] : memref<6x16x512xf32, #tpu.memory_space<vmem>>, vector<1x16x512xf32>
    %45 = vector.shape_cast %44 : vector<1x16x512xf32> to vector<16x512xf32>
    %46 = arith.subf %45, %19 : vector<16x512xf32>
    %47 = math.exp %46 : vector<16x512xf32>
    %48 = arith.addf %43, %47 : vector<16x512xf32>
    %49 = math.log %48 : vector<16x512xf32>
    %50 = arith.addf %19, %49 : vector<16x512xf32>
    %cst = arith.constant 0.000000e+00 : f32
    %51 = vector.broadcast %cst : f32 to vector<16x512xf32>
    %c0_32 = arith.constant 0 : index
    %c0_33 = arith.constant 0 : index
    %52 = memref.load %arg1[%c0_32, %c0_33] : memref<2x6xf32, #tpu.memory_space<smem>>
    %c1_34 = arith.constant 1 : index
    %c0_35 = arith.constant 0 : index
    %53 = memref.load %arg1[%c1_34, %c0_35] : memref<2x6xf32, #tpu.memory_space<smem>>
    %c0_i32 = arith.constant 0 : i32
    %54 = vector.broadcast %c0_i32 : i32 to vector<16x512xi32>
    %55 = arith.cmpi eq, %0, %54 : vector<16x512xi32>
    %cst_36 = arith.constant 0.000000e+00 : f32
    %56 = vector.broadcast %53 : f32 to vector<16x512xf32>
    %57 = vector.broadcast %cst_36 : f32 to vector<16x512xf32>
    %58 = arith.select %55, %56, %57 : vector<16x512xi1>, vector<16x512xf32>
    %59 = vector.broadcast %52 : f32 to vector<16x512xf32>
    %60 = arith.addf %59, %58 : vector<16x512xf32>
    %c0_37 = arith.constant 0 : index
    %c0_38 = arith.constant 0 : index
    %c0_39 = arith.constant 0 : index
    %61 = vector.load %arg2[%c0_37, %c0_38, %c0_39] : memref<6x16x512xf32, #tpu.memory_space<vmem>>, vector<1x16x512xf32>
    %62 = vector.shape_cast %61 : vector<1x16x512xf32> to vector<16x512xf32>
    %63 = arith.subf %50, %62 : vector<16x512xf32>
    %64 = arith.mulf %60, %63 : vector<16x512xf32>
    %65 = arith.addf %51, %64 : vector<16x512xf32>
    %c0_40 = arith.constant 0 : index
    %c1_41 = arith.constant 1 : index
    %66 = memref.load %arg1[%c0_40, %c1_41] : memref<2x6xf32, #tpu.memory_space<smem>>
    %c1_42 = arith.constant 1 : index
    %c1_43 = arith.constant 1 : index
    %67 = memref.load %arg1[%c1_42, %c1_43] : memref<2x6xf32, #tpu.memory_space<smem>>
    %c1_i32 = arith.constant 1 : i32
    %68 = vector.broadcast %c1_i32 : i32 to vector<16x512xi32>
    %69 = arith.cmpi eq, %0, %68 : vector<16x512xi32>
    %cst_44 = arith.constant 0.000000e+00 : f32
    %70 = vector.broadcast %67 : f32 to vector<16x512xf32>
    %71 = vector.broadcast %cst_44 : f32 to vector<16x512xf32>
    %72 = arith.select %69, %70, %71 : vector<16x512xi1>, vector<16x512xf32>
    %73 = vector.broadcast %66 : f32 to vector<16x512xf32>
    %74 = arith.addf %73, %72 : vector<16x512xf32>
    %c1_45 = arith.constant 1 : index
    %c0_46 = arith.constant 0 : index
    %c0_47 = arith.constant 0 : index
    %75 = vector.load %arg2[%c1_45, %c0_46, %c0_47] : memref<6x16x512xf32, #tpu.memory_space<vmem>>, vector<1x16x512xf32>
    %76 = vector.shape_cast %75 : vector<1x16x512xf32> to vector<16x512xf32>
    %77 = arith.subf %50, %76 : vector<16x512xf32>
    %78 = arith.mulf %74, %77 : vector<16x512xf32>
    %79 = arith.addf %65, %78 : vector<16x512xf32>
    %c0_48 = arith.constant 0 : index
    %c2_49 = arith.constant 2 : index
    %80 = memref.load %arg1[%c0_48, %c2_49] : memref<2x6xf32, #tpu.memory_space<smem>>
    %c1_50 = arith.constant 1 : index
    %c2_51 = arith.constant 2 : index
    %81 = memref.load %arg1[%c1_50, %c2_51] : memref<2x6xf32, #tpu.memory_space<smem>>
    %c2_i32 = arith.constant 2 : i32
    %82 = vector.broadcast %c2_i32 : i32 to vector<16x512xi32>
    %83 = arith.cmpi eq, %0, %82 : vector<16x512xi32>
    %cst_52 = arith.constant 0.000000e+00 : f32
    %84 = vector.broadcast %81 : f32 to vector<16x512xf32>
    %85 = vector.broadcast %cst_52 : f32 to vector<16x512xf32>
    %86 = arith.select %83, %84, %85 : vector<16x512xi1>, vector<16x512xf32>
    %87 = vector.broadcast %80 : f32 to vector<16x512xf32>
    %88 = arith.addf %87, %86 : vector<16x512xf32>
    %c2_53 = arith.constant 2 : index
    %c0_54 = arith.constant 0 : index
    %c0_55 = arith.constant 0 : index
    %89 = vector.load %arg2[%c2_53, %c0_54, %c0_55] : memref<6x16x512xf32, #tpu.memory_space<vmem>>, vector<1x16x512xf32>
    %90 = vector.shape_cast %89 : vector<1x16x512xf32> to vector<16x512xf32>
    %91 = arith.subf %50, %90 : vector<16x512xf32>
    %92 = arith.mulf %88, %91 : vector<16x512xf32>
    %93 = arith.addf %79, %92 : vector<16x512xf32>
    %c0_56 = arith.constant 0 : index
    %c3_57 = arith.constant 3 : index
    %94 = memref.load %arg1[%c0_56, %c3_57] : memref<2x6xf32, #tpu.memory_space<smem>>
    %c1_58 = arith.constant 1 : index
    %c3_59 = arith.constant 3 : index
    %95 = memref.load %arg1[%c1_58, %c3_59] : memref<2x6xf32, #tpu.memory_space<smem>>
    %c3_i32 = arith.constant 3 : i32
    %96 = vector.broadcast %c3_i32 : i32 to vector<16x512xi32>
    %97 = arith.cmpi eq, %0, %96 : vector<16x512xi32>
    %cst_60 = arith.constant 0.000000e+00 : f32
    %98 = vector.broadcast %95 : f32 to vector<16x512xf32>
    %99 = vector.broadcast %cst_60 : f32 to vector<16x512xf32>
    %100 = arith.select %97, %98, %99 : vector<16x512xi1>, vector<16x512xf32>
    %101 = vector.broadcast %94 : f32 to vector<16x512xf32>
    %102 = arith.addf %101, %100 : vector<16x512xf32>
    %c3_61 = arith.constant 3 : index
    %c0_62 = arith.constant 0 : index
    %c0_63 = arith.constant 0 : index
    %103 = vector.load %arg2[%c3_61, %c0_62, %c0_63] : memref<6x16x512xf32, #tpu.memory_space<vmem>>, vector<1x16x512xf32>
    %104 = vector.shape_cast %103 : vector<1x16x512xf32> to vector<16x512xf32>
    %105 = arith.subf %50, %104 : vector<16x512xf32>
    %106 = arith.mulf %102, %105 : vector<16x512xf32>
    %107 = arith.addf %93, %106 : vector<16x512xf32>
    %c0_64 = arith.constant 0 : index
    %c4_65 = arith.constant 4 : index
    %108 = memref.load %arg1[%c0_64, %c4_65] : memref<2x6xf32, #tpu.memory_space<smem>>
    %c1_66 = arith.constant 1 : index
    %c4_67 = arith.constant 4 : index
    %109 = memref.load %arg1[%c1_66, %c4_67] : memref<2x6xf32, #tpu.memory_space<smem>>
    %c4_i32 = arith.constant 4 : i32
    %110 = vector.broadcast %c4_i32 : i32 to vector<16x512xi32>
    %111 = arith.cmpi eq, %0, %110 : vector<16x512xi32>
    %cst_68 = arith.constant 0.000000e+00 : f32
    %112 = vector.broadcast %109 : f32 to vector<16x512xf32>
    %113 = vector.broadcast %cst_68 : f32 to vector<16x512xf32>
    %114 = arith.select %111, %112, %113 : vector<16x512xi1>, vector<16x512xf32>
    %115 = vector.broadcast %108 : f32 to vector<16x512xf32>
    %116 = arith.addf %115, %114 : vector<16x512xf32>
    %c4_69 = arith.constant 4 : index
    %c0_70 = arith.constant 0 : index
    %c0_71 = arith.constant 0 : index
    %117 = vector.load %arg2[%c4_69, %c0_70, %c0_71] : memref<6x16x512xf32, #tpu.memory_space<vmem>>, vector<1x16x512xf32>
    %118 = vector.shape_cast %117 : vector<1x16x512xf32> to vector<16x512xf32>
    %119 = arith.subf %50, %118 : vector<16x512xf32>
    %120 = arith.mulf %116, %119 : vector<16x512xf32>
    %121 = arith.addf %107, %120 : vector<16x512xf32>
    %c0_72 = arith.constant 0 : index
    %c5_73 = arith.constant 5 : index
    %122 = memref.load %arg1[%c0_72, %c5_73] : memref<2x6xf32, #tpu.memory_space<smem>>
    %c1_74 = arith.constant 1 : index
    %c5_75 = arith.constant 5 : index
    %123 = memref.load %arg1[%c1_74, %c5_75] : memref<2x6xf32, #tpu.memory_space<smem>>
    %c5_i32 = arith.constant 5 : i32
    %124 = vector.broadcast %c5_i32 : i32 to vector<16x512xi32>
    %125 = arith.cmpi eq, %0, %124 : vector<16x512xi32>
    %cst_76 = arith.constant 0.000000e+00 : f32
    %126 = vector.broadcast %123 : f32 to vector<16x512xf32>
    %127 = vector.broadcast %cst_76 : f32 to vector<16x512xf32>
    %128 = arith.select %125, %126, %127 : vector<16x512xi1>, vector<16x512xf32>
    %129 = vector.broadcast %122 : f32 to vector<16x512xf32>
    %130 = arith.addf %129, %128 : vector<16x512xf32>
    %c5_77 = arith.constant 5 : index
    %c0_78 = arith.constant 0 : index
    %c0_79 = arith.constant 0 : index
    %131 = vector.load %arg2[%c5_77, %c0_78, %c0_79] : memref<6x16x512xf32, #tpu.memory_space<vmem>>, vector<1x16x512xf32>
    %132 = vector.shape_cast %131 : vector<1x16x512xf32> to vector<16x512xf32>
    %133 = arith.subf %50, %132 : vector<16x512xf32>
    %134 = arith.mulf %130, %133 : vector<16x512xf32>
    %135 = arith.addf %121, %134 : vector<16x512xf32>
    %cst_80 = arith.constant 0.000000e+00 : f32
    %136 = vector.broadcast %cst_80 : f32 to vector<16x512xf32>
    %137 = arith.select %2, %135, %136 : vector<16x512xi1>, vector<16x512xf32>
    %138 = vector.shape_cast %137 : vector<16x512xf32> to vector<1x16x512xf32>
    %cst_81 = arith.constant dense<0.000000e+00> : vector<1xf32>
    %139 = vector.multi_reduction <add>, %138, %cst_81 [1, 2] : vector<1x16x512xf32> to vector<1xf32>
    %140 = vector.shape_cast %139 : vector<1xf32> to vector<1x1x1xf32>
    %141 = vector.extract %140[0, 0, 0] : f32 from vector<1x1x1xf32>
    %142 = arith.extui %2 : vector<16x512xi1> to vector<16x512xi32>
    %143 = arith.sitofp %142 : vector<16x512xi32> to vector<16x512xf32>
    %144 = vector.shape_cast %143 : vector<16x512xf32> to vector<1x16x512xf32>
    %cst_82 = arith.constant dense<0.000000e+00> : vector<1xf32>
    %145 = vector.multi_reduction <add>, %144, %cst_82 [1, 2] : vector<1x16x512xf32> to vector<1xf32>
    %146 = vector.shape_cast %145 : vector<1xf32> to vector<1x1x1xf32>
    %147 = vector.extract %146[0, 0, 0] : f32 from vector<1x1x1xf32>
    %148 = tpu.iota {dimensions = array<i32: 0>} : vector<8x128xi32>
    %c0_i32_83 = arith.constant 0 : i32
    %149 = vector.broadcast %c0_i32_83 : i32 to vector<8x128xi32>
    %150 = arith.cmpi eq, %148, %149 : vector<8x128xi32>
    %151 = vector.broadcast %141 : f32 to vector<8x128xf32>
    %152 = vector.broadcast %147 : f32 to vector<8x128xf32>
    %153 = arith.select %150, %151, %152 : vector<8x128xi1>, vector<8x128xf32>
    %c0_84 = arith.constant 0 : index
    %c0_85 = arith.constant 0 : index
    %c0_86 = arith.constant 0 : index
    %154 = vector.load %arg4[%c0_84, %c0_85, %c0_86] : memref<1x8x128xf32, #tpu.memory_space<vmem>>, vector<1x8x128xf32>
    %155 = vector.shape_cast %154 : vector<1x8x128xf32> to vector<8x128xf32>
    %156 = vector.shape_cast %153 : vector<8x128xf32> to vector<1x8x128xf32>
    tpu.vector_store %arg4[%c0_84, %c0_85, %c0_86], %156 {strides = array<i32>} : memref<1x8x128xf32, #tpu.memory_space<vmem>>, vector<1x8x128xf32>,
    return
  }
  func.func @transform_0(%arg0: i32) -> (i32, i32) {
    %c0_i32 = arith.constant 0 : i32
    %c0_i32_0 = arith.constant 0 : i32
    %c0_i32_1 = arith.constant 0 : i32
    return %c0_i32, %c0_i32_0 : i32, i32
  }
  func.func @transform_1(%arg0: i32) -> (i32, i32, i32) {
    %c0_i32 = arith.constant 0 : i32
    %c0_i32_0 = arith.constant 0 : i32
    %c0_i32_1 = arith.constant 0 : i32
    return %c0_i32, %arg0, %c0_i32_0 : i32, i32, i32
  }
  func.func @transform_2(%arg0: i32) -> (i32, i32) {
    %c0_i32 = arith.constant 0 : i32
    %c0_i32_0 = arith.constant 0 : i32
    return %arg0, %c0_i32 : i32, i32
  }
  func.func @transform_3(%arg0: i32) -> (i32, i32, i32) {
    %c0_i32 = arith.constant 0 : i32
    %c0_i32_0 = arith.constant 0 : i32
    %c0_i32_1 = arith.constant 0 : i32
    return %arg0, %c0_i32, %c0_i32_0 : i32, i32, i32
  }
}

</mosaic_0001>

<bundles_post_ra>
// kernel: tpu_custom_call.1
= control target key start
LH: loop header
LB: loop body
LE: loop exit
PB: predicated region body
PF: predicated region fallthrough
CT: control target
= control target key end

     0   :  { %8 = vsyncpa [#allocation5], 0  ;;  %s1854_s0 = inlined_call_operand.hbm [shape: f32[2,6], index: 0, kind: input, shape index: {}]   ;;  %s1855_s1 = inlined_call_operand.hbm [shape: f32[6,16,512], index: 1, kind: input, shape index: {}]   ;;  %s1856_s2 = inlined_call_operand.hbm [shape: s32[16,512], index: 2, kind: input, shape index: {}]   ;;  %s1857_s3 = inlined_call_operand.hbm [shape: f32[1,8,128], index: 3, kind: output, shape index: {}]  }
   0x1   :  { %9 = vsyncpa [#allocation3], 0 }
   0x2   :  { %10 = vsyncpa [#allocation8], 0 }
   0x3   :  { %11 = vsyncpa [#allocation4], 0  ;;  %s1006_s12 = smov [#allocation2]   ;;  %s1007_s15 = smov [#allocation6]  }
   0x4   :  { %19 = dma.hbm_to_smem %s1854_s0, 32, %s1006_s12, [#allocation5]  }
   0x5   :  { %s25_s16 = sshll.u32 %s1007_s15, 4  ;;  %s26_s16 = int_to_ptr.vmem [resolvable:$true] %s25_s16 }
   0x6   :  { %s946_s17 = scalar_lea.vmem %s26_s16, 6144  ;;  %p951_p1 = scmp.lt.s32.totalorder %s26_s16, %s26_s16 }
   0x7   :  { %p947_p0 = scmp.ne.s32.totalorder %s26_s16, %s946_s17  ;;  %p952_p2 = scmp.lt.s32.totalorder %s946_s17, %s946_s17 }
   0x9   :  { %p953_p3 = por %p952_p2, %p951_p1 }
   0xb   :  { %p954_p4 = pnand %p953_p3, %p947_p0 }
   0xd   :  { %957 = shalt.err (!%p954_p4)
}
   0xe   :  { %s1008_s18 = smov 512   ;;  %s1009_s19 = smov 32  }
   0xf   :  { %31 = dma.hbm_to_vmem [thread:$0]  %s1855_s1, 6144, %s26_s16, [#allocation3], %s1008_s18, %s1008_s18, %s1009_s19  }
  0x10   :  { %s1010_s22 = smov [#allocation7]  }
  0x11   :  { %s37_s23 = sshll.u32 %s1010_s22, 4  ;;  %s38_s23 = int_to_ptr.vmem [resolvable:$true] %s37_s23 }
  0x12   :  { %s966_s0 = scalar_lea.vmem %s38_s23, 1024  ;;  %p971_p6 = scmp.lt.s32.totalorder %s38_s23, %s38_s23 }
  0x13   :  { %p967_p5 = scmp.ne.s32.totalorder %s38_s23, %s966_s0  ;;  %p972_p7 = scmp.lt.s32.totalorder %s966_s0, %s966_s0 }
  0x15   :  { %p973_p8 = por %p972_p7, %p971_p6 }
  0x17   :  { %p974_p9 = pnand %p973_p8, %p967_p5 }
  0x19   :  { %977 = shalt.err (!%p974_p9)
}
  0x1a   :  { %43 = dma.hbm_to_vmem [thread:$0]  %s1856_s2, 1024, %s38_s23, [#allocation8], %s1008_s18, %s1008_s18, %s1009_s19  }
  0x1b   :  { %998 = dma.done.wait [#allocation5], 32  }
  0x1c   :  { %999 = vsyncadd [#allocation5], 4294967264 }
  0x1d   :  { %1000 = dma.done.wait [#allocation3], 6144  }
  0x1e   :  { %1001 = vsyncadd [#allocation3], 4294961152 }
  0x1f   :  { %1002 = dma.done.wait [#allocation8], 1024  }
  0x20   :  { %1003 = vsyncadd [#allocation8], 4294966272 }
  0x21   :  { %53 = sfence }
  0x22   :  { %v1042_v0 = vld [vmem:[#allocation6] sm:$0xff]  ;;  %v1044_v1 = vld [vmem:[#allocation6 + $0x8] sm:$0xff]  ;;  %v1046_v2 = vld [vmem:[#allocation6 + $0x10] sm:$0xff]  ;;  %s1090_s1 = sld [smem:[#allocation2 + $0x80]]  ;;  %s1012_s10 = smov [#allocation9]  }
  0x23   :  { %1911 = vst [vmem:[#allocation14_spill] sm:$0xff] %v1042_v0  ;;  %1912 = vst [vmem:[#allocation15_spill] sm:$0xff] %v1044_v1  ;;  %v1048_v3 = vld [vmem:[#allocation6 + $0x18] sm:$0xff]  ;;  %v1050_v4 = vld [vmem:[#allocation6 + $0x20] sm:$0xff]  ;;  %s1117_s2 = sld [smem:[#allocation2]]  ;;  %s752_s11 = sshll.u32 %s1012_s10, 4  ;;  %s753_s11 = int_to_ptr.vmem [resolvable:$true] %s752_s11 }
  0x24   :  { %1913 = vst [vmem:[#allocation16_spill] sm:$0xff] %v1046_v2  ;;  %1914 = vst [vmem:[#allocation17_spill] sm:$0xff] %v1048_v3  ;;  %v1052_v5 = vld [vmem:[#allocation6 + $0x28] sm:$0xff]  ;;  %v1054_v6 = vld [vmem:[#allocation6 + $0x30] sm:$0xff]  ;;  %s1384_s26 = sld [smem:[#allocation2 + $0x81]]  ;;  %s978_s13 = scalar_lea.vmem %s753_s11, 128 }
  0x25   :  { %1915 = vst [vmem:[#allocation18_spill] sm:$0xff] %v1050_v4  ;;  %1916 = vst [vmem:[#allocation19_spill] sm:$0xff] %v1052_v5  ;;  %v1056_v7 = vld [vmem:[#allocation7] sm:$0xff]  ;;  %v1058_v8 = vld [vmem:[#allocation6 + $0x38] sm:$0xff]  ;;  %s1417_s27 = sld [smem:[#allocation2 + $0x1]]  ;;  %p979_p10 = scmp.ne.s32.totalorder %s753_s11, %s978_s13 }
  0x26   :  { %1917 = vst [vmem:[#allocation20_spill] sm:$0xff] %v1054_v6  ;;  %1918 = vst [vmem:[#allocation21_spill] sm:$0xff] %v1056_v7  ;;  %v1060_v9 = vld [vmem:[#allocation6 + $0x40] sm:$0xff]  ;;  %v1062_v10 = vld [vmem:[#allocation6 + $0x48] sm:$0xff]  ;;  %vm373_vm0 = vcmp.eq.s32.totalorder %v1056_v7, 0  ;;  %s1450_s28 = sld [smem:[#allocation2 + $0x82]]  ;;  %p983_p11 = scmp.lt.s32.totalorder %s753_s11, %s753_s11 }
  0x27   :  { %1919 = vst [vmem:[#allocation22_spill] sm:$0xff] %v1058_v8  ;;  %1920 = vst [vmem:[#allocation23_spill] sm:$0xff] %v1060_v9  ;;  %v1064_v11 = vld [vmem:[#allocation7 + $0x8] sm:$0xff]  ;;  %v1066_v12 = vld [vmem:[#allocation6 + $0x50] sm:$0xff]  ;;  %v87_v15 = vmax.f32 %v1042_v0, %v1060_v9  ;;  %v88_v16 = vmax.f32 %v1044_v1, %v1062_v10  ;;  %s1466_s29 = sld [smem:[#allocation2 + $0x2]]  ;;  %p984_p12 = scmp.lt.s32.totalorder %s978_s13, %s978_s13 }
  0x28   :  { %1921 = vst [vmem:[#allocation24_spill] sm:$0xff] %v1062_v10  ;;  %1922 = vst [vmem:[#allocation25_spill] sm:$0xff] %v1066_v12  ;;  %v1068_v13 = vld [vmem:[#allocation6 + $0x58] sm:$0xff]  ;;  %v1070_v14 = vld [vmem:[#allocation6 + $0x60] sm:$0xff]  ;;  %v89_v21 = vmax.f32 %v1046_v2, %v1066_v12  ;;  %vm374_vm1 = vcmp.eq.s32.totalorder %v1064_v11, 0  ;;  %vm426_vm9 = vcmp.eq.s32.totalorder %v1064_v11, 1 }
  0x29   :  { %1923 = vst [vmem:[#allocation26_spill] sm:$0xff] %v1068_v13  ;;  %1924 = vst [vmem:[#allocation27_spill] sm:$0xff] %v1070_v14  ;;  %v1076_v17 = vld [vmem:[#allocation7 + $0x10] sm:$0xff]  ;;  %v1078_v18 = vld [vmem:[#allocation6 + $0x68] sm:$0xff]  ;;  %v90_v22 = vmax.f32 %v1048_v3, %v1068_v13  ;;  %v91_v23 = vmax.f32 %v1050_v4, %v1070_v14  ;;  %s1496_s30 = sld [smem:[#allocation2 + $0x83]]  ;;  %p985_p13 = por %p984_p12, %p983_p11 }
  0x2a   :  { %1925 = vst [vmem:[#allocation28_spill] sm:$0xff] %v1078_v18  ;;  %v1080_v19 = vld [vmem:[#allocation6 + $0x70] sm:$0xff]  ;;  %v1082_v20 = vld [vmem:[#allocation6 + $0x78] sm:$0xff]  ;;  %v92_v25 = vmax.f32 %v1052_v5, %v1078_v18  ;;  %v1100_v28 = vld [vmem:[#allocation6 + $0x80] sm:$0xff]  ;;  %vm375_vm2 = vcmp.eq.s32.totalorder %v1076_v17, 0  ;;  %vm427_vm10 = vcmp.eq.s32.totalorder %v1076_v17, 1 }
  0x2b   :  { %1926 = vst [vmem:[#allocation29_spill] sm:$0xff] %v1080_v19  ;;  %1927 = vst [vmem:[#allocation30_spill] sm:$0xff] %v1082_v20  ;;  %v1092_v24 = vld [vmem:[#allocation7 + $0x18] sm:$0xff]  ;;  %v93_v26 = vmax.f32 %v1054_v6, %v1080_v19  ;;  %v94_v27 = vmax.f32 %v1058_v8, %v1082_v20  ;;  %v1102_v29 = vld [vmem:[#allocation6 + $0x88] sm:$0xff]  ;;  %v104_v35 = vmax.f32 %v87_v15, %v1100_v28  ;;  %s1519_s4 = sld [smem:[#allocation2 + $0x3]]  ;;  %p986_p0 = pnand %p985_p13, %p979_p10 }
  0x2c   :  { %1928 = vst [vmem:[#allocation31_spill] sm:$0xff] %v1092_v24  ;;  %1929 = vst [vmem:[#allocation32_spill] sm:$0xff] %v1100_v28  ;;  %v1104_v30 = vld [vmem:[#allocation6 + $0x90] sm:$0xff]  ;;  %v1106_v31 = vld [vmem:[#allocation7 + $0x20] sm:$0xff]  ;;  %v105_v36 = vmax.f32 %v88_v16, %v1102_v29  ;;  %vm376_vm3 = vcmp.eq.s32.totalorder %v1092_v24, 0  ;;  %s1532_s5 = sld [smem:[#allocation2 + $0x84]] }
  0x2d   :  { %1930 = vst [vmem:[#allocation33_spill] sm:$0xff] %v1102_v29  ;;  %1931 = vst [vmem:[#allocation34_spill] sm:$0xff] %v1104_v30  ;;  %v1108_v32 = vld [vmem:[#allocation6 + $0x98] sm:$0xff]  ;;  %v1110_v33 = vld [vmem:[#allocation6 + $0xa0] sm:$0xff]  ;;  %v106_v37 = vmax.f32 %v89_v21, %v1104_v30  ;;  %vm377_vm4 = vcmp.eq.s32.totalorder %v1106_v31, 0  ;;  %s1544_s6 = sld [smem:[#allocation2 + $0x4]] }
  0x2e   :  { %1932 = vst [vmem:[#allocation35_spill] sm:$0xff] %v1106_v31  ;;  %1933 = vst [vmem:[#allocation36_spill] sm:$0xff] %v1108_v32  ;;  %v1112_v34 = vld [vmem:[#allocation6 + $0xa8] sm:$0xff]  ;;  %v1121_v39 = vld [vmem:[#allocation6 + $0xb0] sm:$0xff]  ;;  %v107_v41 = vmax.f32 %v90_v22, %v1108_v32  ;;  %v108_v42 = vmax.f32 %v91_v23, %v1110_v33  ;;  %s1739_s7 = sld [smem:[#allocation2 + $0x5]] }
  0x2f   :  { %1934 = vst [vmem:[#allocation37_spill] sm:$0xff] %v1110_v33  ;;  %1935 = vst [vmem:[#allocation38_spill] sm:$0xff] %v1112_v34  ;;  %v1119_v38 = vld [vmem:[#allocation7 + $0x28] sm:$0xff]  ;;  %v1123_v40 = vld [vmem:[#allocation6 + $0xb8] sm:$0xff]  ;;  %v109_v43 = vmax.f32 %v92_v25, %v1112_v34  ;;  %v110_v46 = vmax.f32 %v93_v26, %v1121_v39  ;;  %s1744_s8 = sld [smem:[#allocation2 + $0x85]] }
  0x30   :  { %1936 = vst [vmem:[#allocation39_spill] sm:$0xff] %v1119_v38  ;;  %1937 = vst [vmem:[#allocation40_spill] sm:$0xff] %v1121_v39  ;;  %v1128_v44 = vld [vmem:[#allocation6 + $0xc0] sm:$0xff]  ;;  %v1131_v45 = vld [vmem:[#allocation7 + $0x30] sm:$0xff]  ;;  %v111_v47 = vmax.f32 %v94_v27, %v1123_v40  ;;  %vm378_vm5 = vcmp.eq.s32.totalorder %v1119_v38, 0 }
  0x31   :  { %1938 = vst [vmem:[#allocation41_spill] sm:$0xff] %v1123_v40  ;;  %1939 = vst [vmem:[#allocation42_spill] sm:$0xff] %v1131_v45  ;;  %v1135_v48 = vld [vmem:[#allocation6 + $0xc8] sm:$0xff]  ;;  %v1137_v49 = vld [vmem:[#allocation6 + $0xd0] sm:$0xff]  ;;  %v121_v51 = vmax.f32 %v104_v35, %v1128_v44  ;;  %vm379_vm6 = vcmp.eq.s32.totalorder %v1131_v45, 0 }
  0x32   :  { %1940 = vst [vmem:[#allocation43_spill] sm:$0xff] %v1135_v48  ;;  %1941 = vst [vmem:[#allocation44_spill] sm:$0xff] %v1137_v49  ;;  %v1139_v50 = vld [vmem:[#allocation6 + $0xd8] sm:$0xff]  ;;  %v1143_v52 = vld [vmem:[#allocation6 + $0xe0] sm:$0xff]  ;;  %v122_v55 = vmax.f32 %v105_v36, %v1135_v48  ;;  %v123_v56 = vmax.f32 %v106_v37, %v1137_v49 }
  0x33   :  { %1942 = vst [vmem:[#allocation45_spill] sm:$0xff] %v1139_v50  ;;  %1943 = vst [vmem:[#allocation46_spill] sm:$0xff] %v1143_v52  ;;  %v1145_v53 = vld [vmem:[#allocation6 + $0xe8] sm:$0xff]  ;;  %v1147_v54 = vld [vmem:[#allocation6 + $0xf0] sm:$0xff]  ;;  %v124_v57 = vmax.f32 %v107_v41, %v1139_v50  ;;  %v125_v60 = vmax.f32 %v108_v42, %v1143_v52 }
  0x34   :  { %1944 = vst [vmem:[#allocation47_spill] sm:$0xff] %v1145_v53  ;;  %1945 = vst [vmem:[#allocation48_spill] sm:$0xff] %v1147_v54  ;;  %v1153_v58 = vld [vmem:[#allocation7 + $0x38] sm:$0xff]  ;;  %v126_v61 = vmax.f32 %v109_v43, %v1145_v53  ;;  %v127_v62 = vmax.f32 %v110_v46, %v1147_v54  ;;  %v1160_v63 = vld [vmem:[#allocation6 + $0x100] sm:$0xff]  ;;  %v1186_v43 = vstv %s1090_s1 }
  0x35   :  { %1946 = vst [vmem:[#allocation49_spill] sm:$0xff] %v1153_v58  ;;  %v1155_v59 = vld [vmem:[#allocation6 + $0xf8] sm:$0xff]  ;;  %v1162_v15 = vld [vmem:[#allocation6 + $0x108] sm:$0xff]  ;;  %v1166_v21 = vld [vmem:[#allocation6 + $0x110] sm:$0xff]  ;;  %v138_v25 = vmax.f32 %v121_v51, %v1160_v63  ;;  %vm380_vm7 = vcmp.eq.s32.totalorder %v1153_v58, 0 }
  0x36   :  { %1947 = vst [vmem:[#allocation50_spill] sm:$0xff] %v1155_v59  ;;  %1948 = vst [vmem:[#allocation51_spill] sm:$0xff] %v1162_v15  ;;  %v128_v16 = vmax.f32 %v111_v47, %v1155_v59  ;;  %v1168_v22 = vld [vmem:[#allocation6 + $0x118] sm:$0xff]  ;;  %v1170_v23 = vld [vmem:[#allocation6 + $0x120] sm:$0xff]  ;;  %v139_v26 = vmax.f32 %v122_v55, %v1162_v15  ;;  %v140_v37 = vmax.f32 %v123_v56, %v1166_v21 }
  0x37   :  { %1949 = vst [vmem:[#allocation52_spill] sm:$0xff] %v1166_v21  ;;  %1950 = vst [vmem:[#allocation53_spill] sm:$0xff] %v1168_v22  ;;  %v1175_v27 = vld [vmem:[#allocation6 + $0x128] sm:$0xff]  ;;  %v1177_v35 = vld [vmem:[#allocation6 + $0x130] sm:$0xff]  ;;  %v141_v41 = vmax.f32 %v124_v57, %v1168_v22  ;;  %v142_v42 = vmax.f32 %v125_v60, %v1170_v23 }
  0x38   :  { %1951 = vst [vmem:[#allocation54_spill] sm:$0xff] %v1170_v23  ;;  %1952 = vst [vmem:[#allocation55_spill] sm:$0xff] %v1175_v27  ;;  %v1179_v36 = vld [vmem:[#allocation6 + $0x138] sm:$0xff]  ;;  %v143_v46 = vmax.f32 %v126_v61, %v1175_v27  ;;  %v144_v47 = vmax.f32 %v127_v62, %v1177_v35  ;;  %v1191_v55 = vld [vmem:[#allocation6 + $0x140] sm:$0xff] }
  0x39   :  { %1953 = vst [vmem:[#allocation56_spill] sm:$0xff] %v1177_v35  ;;  %1954 = vst [vmem:[#allocation57_spill] sm:$0xff] %v1179_v36  ;;  %v145_v51 = vmax.f32 %v128_v16, %v1179_v36  ;;  %v1193_v15 = vld [vmem:[#allocation6 + $0x148] sm:$0xff]  ;;  %v1195_v56 = vld [vmem:[#allocation6 + $0x150] sm:$0xff]  ;;  %v1205_v61 = vmax.f32 %v138_v25, %v1191_v55  ;;  %v1214_v36 = vstv %s1117_s2 }
  0x3a   :  { %v1198_v57 = vld [vmem:[#allocation6 + $0x158] sm:$0xff]  ;;  %v1200_v60 = vld [vmem:[#allocation6 + $0x160] sm:$0xff]  ;;  %v1202_v23 = vld [vmem:[#allocation6 + $0x168] sm:$0xff]  ;;  %v1208_v62 = vmax.f32 %v139_v26, %v1193_v15  ;;  %v1211_v16 = vmax.f32 %v140_v37, %v1195_v56  ;;  %1955 = vst [vmem:[#allocation58_spill] sm:$0xff] %v1214_v36  ;;  %v1233_v26 = vsel %vm373_vm0, %v1186_v43, 0.0 }
  0x3b   :  { %v1216_v35 = vld [vmem:[#allocation6 + $0x170] sm:$0xff]  ;;  %v1218_v27 = vld [vmem:[#allocation6 + $0x178] sm:$0xff]  ;;  %v1221_v22 = vmax.f32 %v141_v41, %v1198_v57  ;;  %v1224_v21 = vmax.f32 %v142_v42, %v1200_v60  ;;  %v1227_v25 = vmax.f32 %v143_v46, %v1202_v23  ;;  %1958 = vst [vmem:[#allocation61_spill] sm:$0xff] %v1233_v26  ;;  %v163_v41 = vsub.f32 %v1042_v0, %v1205_v61 }
  0x3c   :  { %1956 = vst [vmem:[#allocation59_spill] sm:$0xff] %v1216_v35  ;;  %1957 = vst [vmem:[#allocation60_spill] sm:$0xff] %v1218_v27  ;;  %v1236_v37 = vmax.f32 %v144_v47, %v1216_v35  ;;  %v1239_v36 = vmax.f32 %v145_v51, %v1218_v27  ;;  %v164_v42 = vsub.f32 %v1044_v1, %v1208_v62  ;;  %v1258_v1 = vsel %vm374_vm1, %v1186_v43, 0.0 }
  0x3d   :  { %v165_v46 = vsub.f32 %v1046_v2, %v1211_v16  ;;  %v166_v7 = vsub.f32 %v1048_v3, %v1221_v22  ;;  %v167_v26 = vsub.f32 %v1050_v4, %v1224_v21  ;;  %v168_v47 = vsub.f32 %v1052_v5, %v1227_v25 }
  0x3e   :  { %v169_v51 = vsub.f32 %v1054_v6, %v1236_v37  ;;  %v171_v27 = vmul.f32 1.442695, %v163_v41  ;;  %v173_v0 = vmul.f32 1.442695, %v164_v42  ;;  %v170_v2 = vsub.f32 %v1058_v8, %v1239_v36 }
  0x3f   :  { %v175_v3 = vmul.f32 1.442695, %v165_v46  ;;  %v177_v35 = vmul.f32 1.442695, %v166_v7  ;;  %v1265_v4 = vsel %vm375_vm2, %v1186_v43, 0.0  ;;  %v187_v41 = vsub.f32 %v1060_v9, %v1205_v61 }
  0x40   :  { %793 = vpow2.f32 %v171_v27  ;;  %v179_v5 = vmul.f32 1.442695, %v167_v26  ;;  %v1272_v42 = vsel %vm376_vm3, %v1186_v43, 0.0  ;;  %v181_v6 = vmul.f32 1.442695, %v168_v47 }
  0x41   :  { %795 = vpow2.f32 %v173_v0  ;;  %v188_v7 = vsub.f32 %v1062_v10, %v1208_v62  ;;  %v1279_v46 = vsel %vm377_vm4, %v1186_v43, 0.0  ;;  %v183_v27 = vmul.f32 1.442695, %v169_v51 }
  0x42   :  { %797 = vpow2.f32 %v175_v3  ;;  %v189_v26 = vsub.f32 %v1066_v12, %v1211_v16  ;;  %v190_v8 = vsub.f32 %v1068_v13, %v1221_v22  ;;  %v185_v9 = vmul.f32 1.442695, %v170_v2 }
  0x43   :  { %799 = vpow2.f32 %v177_v35  ;;  %v1288_v0 = vsel %vm378_vm5, %v1186_v43, 0.0  ;;  %v1293_v47 = vsel %vm379_vm6, %v1186_v43, 0.0  ;;  %v191_v3 = vsub.f32 %v1070_v14, %v1224_v21 }
  0x44   :  { %801 = vpow2.f32 %v179_v5  ;;  %v192_v51 = vsub.f32 %v1078_v18, %v1227_v25  ;;  %v195_v13 = vmul.f32 1.442695, %v187_v41  ;;  %v193_v2 = vsub.f32 %v1080_v19, %v1236_v37 }
  0x45   :  { %803 = vpow2.f32 %v181_v6  ;;  %v194_v35 = vsub.f32 %v1082_v20, %v1239_v36  ;;  %v197_v12 = vmul.f32 1.442695, %v188_v7  ;;  %v199_v10 = vmul.f32 1.442695, %v189_v26 }
  0x46   :  { %805 = vpow2.f32 %v183_v27  ;;  %v201_v45 = vmul.f32 1.442695, %v190_v8  ;;  %v1306_v5 = vsel %vm380_vm7, %v1186_v43, 0.0  ;;  %v219_v41 = vsub.f32 %v1100_v28, %v1205_v61 }
  0x47   :  { %807 = vpow2.f32 %v185_v9  ;;  %v220_v6 = vsub.f32 %v1102_v29, %v1208_v62  ;;  %v221_v19 = vsub.f32 %v1104_v30, %v1211_v16  ;;  %v203_v7 = vmul.f32 1.442695, %v191_v3 }
  0x48   :  { %809 = vpow2.f32 %v195_v13  ;;  %v205_v27 = vmul.f32 1.442695, %v192_v51  ;;  %v222_v8 = vsub.f32 %v1108_v32, %v1221_v22  ;;  %v207_v26 = vmul.f32 1.442695, %v193_v2 }
  0x49   :  { %811 = vpow2.f32 %v197_v12  ;;  %v209_v43 = vmul.f32 1.442695, %v194_v35  ;;  %v223_v9 = vsub.f32 %v1110_v33, %v1224_v21  ;;  %v224_v28 = vsub.f32 %v1112_v34, %v1227_v25  ;;  %v1961_v33 = vld [vmem:[#allocation53_spill] sm:$0xff] }
  0x4a   :  { %813 = vpow2.f32 %v199_v10  ;;  %v225_v29 = vsub.f32 %v1121_v39, %v1236_v37  ;;  %v226_v13 = vsub.f32 %v1123_v40, %v1239_v36  ;;  %v227_v3 = vmul.f32 1.442695, %v219_v41 }
  0x4b   :  { %815 = vpow2.f32 %v201_v45  ;;  %v229_v51 = vmul.f32 1.442695, %v220_v6  ;;  %v231_v32 = vmul.f32 1.442695, %v221_v19  ;;  %v233_v12 = vmul.f32 1.442695, %v222_v8 }
  0x4c   :  { %817 = vpow2.f32 %v203_v7  ;;  %v251_v2 = vsub.f32 %v1128_v44, %v1205_v61  ;;  %v252_v10 = vsub.f32 %v1135_v48, %v1208_v62  ;;  %v235_v34 = vmul.f32 1.442695, %v223_v9 }
  0x4d   :  { %v794_v35 = vpop.eup %793  ;;  %819 = vpow2.f32 %v205_v27  ;;  %v253_v39 = vsub.f32 %v1137_v49, %v1211_v16  ;;  %v254_v45 = vsub.f32 %v1139_v50, %v1221_v22  ;;  %v237_v19 = vmul.f32 1.442695, %v224_v28 }
  0x4e   :  { %v796_v41 = vpop.eup %795  ;;  %821 = vpow2.f32 %v207_v26  ;;  %v239_v6 = vmul.f32 1.442695, %v225_v29  ;;  %v241_v7 = vmul.f32 1.442695, %v226_v13  ;;  %v255_v44 = vsub.f32 %v1143_v52, %v1224_v21 }
  0x4f   :  { %v798_v8 = vpop.eup %797  ;;  %823 = vpow2.f32 %v209_v43  ;;  %v256_v27 = vsub.f32 %v1145_v53, %v1227_v25  ;;  %v257_v9 = vsub.f32 %v1147_v54, %v1236_v37  ;;  %v258_v50 = vsub.f32 %v1155_v59, %v1239_v36  ;;  %v1959_v53 = vld [vmem:[#allocation51_spill] sm:$0xff]  ;;  %v1960_v54 = vld [vmem:[#allocation52_spill] sm:$0xff] }
  0x50   :  { %v800_v49 = vpop.eup %799  ;;  %825 = vpow2.f32 %v227_v3  ;;  %v259_v26 = vmul.f32 1.442695, %v251_v2  ;;  %v261_v28 = vmul.f32 1.442695, %v252_v10  ;;  %v263_v13 = vmul.f32 1.442695, %v253_v39 }
  0x51   :  { %v802_v29 = vpop.eup %801  ;;  %827 = vpow2.f32 %v229_v51  ;;  %v265_v43 = vmul.f32 1.442695, %v254_v45  ;;  %v283_v52 = vsub.f32 %v1160_v63, %v1205_v61  ;;  %v284_v40 = vsub.f32 %v1959_v53, %v1208_v62  ;;  %v1962_v51 = vld [vmem:[#allocation54_spill] sm:$0xff]  ;;  %v1963_v10 = vld [vmem:[#allocation55_spill] sm:$0xff]  ;;  %v1964_v63 = vld [vmem:[#allocation56_spill] sm:$0xff] }
  0x52   :  { %v804_v48 = vpop.eup %803  ;;  %829 = vpow2.f32 %v231_v32  ;;  %v285_v3 = vsub.f32 %v1960_v54, %v1211_v16  ;;  %v286_v59 = vsub.f32 %v1961_v33, %v1221_v22  ;;  %v287_v39 = vsub.f32 %v1962_v51, %v1224_v21  ;;  %v1965_v54 = vld [vmem:[#allocation57_spill] sm:$0xff] }
  0x53   :  { %v806_v2 = vpop.eup %805  ;;  %831 = vpow2.f32 %v233_v12  ;;  %v288_v45 = vsub.f32 %v1963_v10, %v1227_v25  ;;  %v289_v32 = vsub.f32 %v1964_v63, %v1236_v37  ;;  %v267_v53 = vmul.f32 1.442695, %v255_v44 }
  0x54   :  { %v808_v30 = vpop.eup %807  ;;  %833 = vpow2.f32 %v235_v34  ;;  %v269_v20 = vmul.f32 1.442695, %v256_v27  ;;  %v290_v18 = vsub.f32 %v1965_v54, %v1239_v36  ;;  %v271_v33 = vmul.f32 1.442695, %v257_v9 }
  0x55   :  { %v810_v14 = vpop.eup %809  ;;  %835 = vpow2.f32 %v237_v19  ;;  %v273_v12 = vmul.f32 1.442695, %v258_v50  ;;  %v291_v58 = vmul.f32 1.442695, %v283_v52  ;;  %v293_v51 = vmul.f32 1.442695, %v284_v40 }
  0x56   :  { %v812_v38 = vpop.eup %811  ;;  %837 = vpow2.f32 %v239_v6  ;;  %v295_v31 = vmul.f32 1.442695, %v285_v3  ;;  %v1356_v10 = vmul.f32 1.442695, %v286_v59  ;;  %v1358_v63 = vmul.f32 1.442695, %v287_v39 }
  0x57   :  { %v814_v24 = vpop.eup %813  ;;  %839 = vpow2.f32 %v241_v7  ;;  %v1360_v34 = vmul.f32 1.442695, %v288_v45  ;;  %v1362_v44 = vmul.f32 1.442695, %v289_v32  ;;  %v211_v54 = vadd.f32 %v810_v14, %v794_v35 }
  0x58   :  { %v816_v27 = vpop.eup %815  ;;  %841 = vpow2.f32 %v259_v26  ;;  %v1364_v19 = vmul.f32 1.442695, %v290_v18  ;;  %v315_v50 = vsub.f32 %v1191_v55, %v1205_v61  ;;  %v212_v52 = vadd.f32 %v812_v38, %v796_v41 }
  0x59   :  { %v818_v40 = vpop.eup %817  ;;  %843 = vpow2.f32 %v261_v28  ;;  %v316_v59 = vsub.f32 %v1193_v15, %v1208_v62  ;;  %v317_v6 = vsub.f32 %v1195_v56, %v1211_v16  ;;  %v213_v9 = vadd.f32 %v814_v24, %v798_v8  ;;  %v1966_v15 = vld [vmem:[#allocation59_spill] sm:$0xff]  ;;  %v1967_v24 = vld [vmem:[#allocation60_spill] sm:$0xff] }
  0x5a   :  { %v820_v7 = vpop.eup %819  ;;  %845 = vpow2.f32 %v263_v13  ;;  %v318_v14 = vsub.f32 %v1198_v57, %v1221_v22  ;;  %v319_v18 = vsub.f32 %v1200_v60, %v1224_v21  ;;  %v214_v55 = vadd.f32 %v816_v27, %v800_v49  ;;  %v1968_v49 = vld [vmem:[#allocation21_spill] sm:$0xff] }
  0x5b   :  { %v822_v35 = vpop.eup %821  ;;  %847 = vpow2.f32 %v265_v43  ;;  %v320_v38 = vsub.f32 %v1202_v23, %v1227_v25  ;;  %v321_v41 = vsub.f32 %v1966_v15, %v1236_v37  ;;  %v215_v56 = vadd.f32 %v818_v40, %v802_v29  ;;  %v1969_v40 = vld [vmem:[#allocation61_spill] sm:$0xff]  ;;  %v1974_v15 = vld [vmem:[#allocation42_spill] sm:$0xff] }
  0x5c   :  { %v824_v26 = vpop.eup %823  ;;  %849 = vpow2.f32 %v267_v53  ;;  %v322_v8 = vsub.f32 %v1967_v24, %v1239_v36  ;;  %v323_v28 = vmul.f32 1.442695, %v315_v50  ;;  %v216_v13 = vadd.f32 %v820_v7, %v804_v48 }
  0x5d   :  { %v826_v57 = vpop.eup %825  ;;  %851 = vpow2.f32 %v269_v20  ;;  %v325_v60 = vmul.f32 1.442695, %v316_v59  ;;  %v1382_v3 = vmul.f32 1.442695, %v317_v6  ;;  %vm425_vm8 = vcmp.eq.s32.totalorder %v1968_v49, 1  ;;  %v1970_v59 = vld [vmem:[#allocation58_spill] sm:$0xff] }
  0x5e   :  { %v828_v23 = vpop.eup %827  ;;  %v217_v43 = vadd.f32 %v822_v35, %v806_v2  ;;  %853 = vpow2.f32 %v271_v33  ;;  %v1387_v39 = vmul.f32 1.442695, %v318_v14  ;;  %v1389_v29 = vmul.f32 1.442695, %v319_v18  ;;  %v1971_v35 = vld [vmem:[#allocation31_spill] sm:$0xff] }
  0x5f   :  { %v830_v45 = vpop.eup %829  ;;  %v218_v32 = vadd.f32 %v824_v26, %v808_v30  ;;  %855 = vpow2.f32 %v273_v12  ;;  %v1391_v53 = vmul.f32 1.442695, %v320_v38  ;;  %v1393_v20 = vmul.f32 1.442695, %v321_v41  ;;  %v1973_v38 = vld [vmem:[#allocation39_spill] sm:$0xff]  ;;  %v1975_v26 = vld [vmem:[#allocation49_spill] sm:$0xff] }
  0x60   :  { %v832_v48 = vpop.eup %831  ;;  %v243_v27 = vadd.f32 %v826_v57, %v211_v54  ;;  %857 = vpow2.f32 %v291_v58  ;;  %v1395_v50 = vmul.f32 1.442695, %v322_v8  ;;  %v1399_v2 = vadd.f32 %v1970_v59, %v1969_v40 }
  0x61   :  { %v834_v33 = vpop.eup %833  ;;  %v244_v6 = vadd.f32 %v828_v23, %v212_v52  ;;  %859 = vpow2.f32 %v293_v51  ;;  %v1403_v30 = vadd.f32 %v1970_v59, %v1258_v1  ;;  %v1407_v12 = vadd.f32 %v1970_v59, %v1265_v4 }
  0x62   :  { %v836_v7 = vpop.eup %835  ;;  %v245_v54 = vadd.f32 %v830_v45, %v213_v9  ;;  %861 = vpow2.f32 %v295_v31  ;;  %v1411_v58 = vadd.f32 %v1970_v59, %v1272_v42  ;;  %v1415_v14 = vadd.f32 %v1970_v59, %v1279_v46 }
  0x63   :  { %v838_v1 = vpop.eup %837  ;;  %v246_v51 = vadd.f32 %v832_v48, %v214_v55  ;;  %863 = vpow2.f32 %v1356_v10  ;;  %v1422_v4 = vadd.f32 %v1970_v59, %v1288_v0  ;;  %v1426_v31 = vadd.f32 %v1970_v59, %v1293_v47 }
  0x64   :  { %v840_v42 = vpop.eup %839  ;;  %v247_v52 = vadd.f32 %v834_v33, %v215_v56  ;;  %865 = vpow2.f32 %v1358_v63  ;;  %v1431_v46 = vadd.f32 %v1970_v59, %v1306_v5  ;;  %v248_v10 = vadd.f32 %v836_v7, %v216_v13  ;;  %v1972_v63 = vld [vmem:[#allocation35_spill] sm:$0xff] }
  0x65   :  { %v842_v9 = vpop.eup %841  ;;  %867 = vpow2.f32 %v1360_v34  ;;  %v433_v0 = vstv %s1384_s26  ;;  %v249_v47 = vadd.f32 %v838_v1, %v217_v43  ;;  %vm428_vm11 = vcmp.eq.s32.totalorder %v1971_v35, 1 }
  0x66   :  { %v844_v18 = vpop.eup %843  ;;  %869 = vpow2.f32 %v1362_v44  ;;  %vm429_vm12 = vcmp.eq.s32.totalorder %v1972_v63, 1  ;;  %v250_v5 = vadd.f32 %v840_v42, %v218_v32  ;;  %vm430_vm13 = vcmp.eq.s32.totalorder %v1973_v38, 1 }
  0x67   :  { %v846_v55 = vpop.eup %845  ;;  %871 = vpow2.f32 %v1364_v19  ;;  %vm431_vm14 = vcmp.eq.s32.totalorder %v1974_v15, 1  ;;  %v275_v41 = vadd.f32 %v842_v9, %v243_v27  ;;  %vm432_vm15 = vcmp.eq.s32.totalorder %v1975_v26, 1 }
  0x68   :  { %v848_v34 = vpop.eup %847  ;;  %873 = vpow2.f32 %v323_v28  ;;  %v434_v44 = vsel %vm425_vm8, %v433_v0, 0.0  ;;  %v276_v24 = vadd.f32 %v844_v18, %v244_v6  ;;  %v435_v8 = vsel %vm426_vm9, %v433_v0, 0.0 }
  0x69   :  { %v850_v56 = vpop.eup %849  ;;  %875 = vpow2.f32 %v325_v60  ;;  %v436_v19 = vsel %vm427_vm10, %v433_v0, 0.0  ;;  %v277_v13 = vadd.f32 %v846_v55, %v245_v54  ;;  %v437_v28 = vsel %vm428_vm11, %v433_v0, 0.0 }
  0x6a   :  { %v852_v57 = vpop.eup %851  ;;  %877 = vpow2.f32 %v1382_v3  ;;  %v442_v23 = vstv %s1417_s27  ;;  %v278_v45 = vadd.f32 %v848_v34, %v246_v51  ;;  %v438_v60 = vsel %vm429_vm12, %v433_v0, 0.0 }
  0x6b   :  { %v854_v43 = vpop.eup %853  ;;  %879 = vpow2.f32 %v1387_v39  ;;  %v439_v32 = vsel %vm430_vm13, %v433_v0, 0.0  ;;  %v279_v27 = vadd.f32 %v850_v56, %v247_v52  ;;  %v440_v3 = vsel %vm431_vm14, %v433_v0, 0.0 }
  0x6c   :  { %v856_v48 = vpop.eup %855  ;;  %881 = vpow2.f32 %v1389_v29  ;;  %v441_v40 = vsel %vm432_vm15, %v433_v0, 0.0  ;;  %v280_v39 = vadd.f32 %v852_v57, %v248_v10  ;;  %v1469_v33 = vadd.f32 %v442_v23, %v434_v44 }
  0x6d   :  { %v858_v59 = vpop.eup %857  ;;  %883 = vpow2.f32 %v1391_v53  ;;  %vm477_vm0 = vcmp.eq.s32.totalorder %v1968_v49, 2  ;;  %v281_v7 = vadd.f32 %v854_v43, %v249_v47  ;;  %v1473_v29 = vadd.f32 %v442_v23, %v435_v8 }
  0x6e   :  { %v860_v6 = vpop.eup %859  ;;  %885 = vpow2.f32 %v1393_v20  ;;  %v1475_v54 = vadd.f32 %v442_v23, %v436_v19  ;;  %v282_v51 = vadd.f32 %v856_v48, %v250_v5  ;;  %v1478_v42 = vadd.f32 %v442_v23, %v437_v28 }
  0x6f   :  { %v862_v1 = vpop.eup %861  ;;  %887 = vpow2.f32 %v1395_v50  ;;  %v1480_v53 = vadd.f32 %v442_v23, %v438_v60  ;;  %v307_v9 = vadd.f32 %v858_v59, %v275_v41  ;;  %v1482_v10 = vadd.f32 %v442_v23, %v439_v32 }
  0x70   :  { %v864_v52 = vpop.eup %863  ;;  %v1484_v0 = vadd.f32 %v442_v23, %v440_v3  ;;  %v1486_v20 = vadd.f32 %v442_v23, %v441_v40  ;;  %v308_v47 = vadd.f32 %v860_v6, %v276_v24  ;;  %vm478_vm1 = vcmp.eq.s32.totalorder %v1064_v11, 2 }
  0x71   :  { %v866_v18 = vpop.eup %865  ;;  %vm479_vm2 = vcmp.eq.s32.totalorder %v1076_v17, 2  ;;  %v485_v55 = vstv %s1450_s28  ;;  %v309_v5 = vadd.f32 %v862_v1, %v277_v13  ;;  %vm480_vm3 = vcmp.eq.s32.totalorder %v1971_v35, 2 }
  0x72   :  { %v868_v50 = vpop.eup %867  ;;  %vm481_vm4 = vcmp.eq.s32.totalorder %v1972_v63, 2  ;;  %vm482_vm5 = vcmp.eq.s32.totalorder %v1973_v38, 2  ;;  %v310_v41 = vadd.f32 %v864_v52, %v278_v45  ;;  %v311_v44 = vadd.f32 %v866_v18, %v279_v27 }
  0x73   :  { %v870_v34 = vpop.eup %869  ;;  %vm483_vm6 = vcmp.eq.s32.totalorder %v1974_v15, 2  ;;  %vm484_vm7 = vcmp.eq.s32.totalorder %v1975_v26, 2  ;;  %v486_v24 = vsel %vm477_vm0, %v485_v55, 0.0  ;;  %v487_v8 = vsel %vm478_vm1, %v485_v55, 0.0 }
  0x74   :  { %v872_v56 = vpop.eup %871  ;;  %v488_v19 = vsel %vm479_vm2, %v485_v55, 0.0  ;;  %v494_v57 = vstv %s1466_s29  ;;  %v312_v28 = vadd.f32 %v868_v50, %v280_v39  ;;  %v489_v23 = vsel %vm480_vm3, %v485_v55, 0.0 }
  0x75   :  { %v874_v13 = vpop.eup %873  ;;  %v490_v43 = vsel %vm481_vm4, %v485_v55, 0.0  ;;  %v491_v45 = vsel %vm482_vm5, %v485_v55, 0.0  ;;  %v313_v32 = vadd.f32 %v870_v34, %v281_v7  ;;  %v492_v27 = vsel %vm483_vm6, %v485_v55, 0.0 }
  0x76   :  { %v876_v60 = vpop.eup %875  ;;  %v339_v48 = vadd.f32 %v874_v13, %v307_v9  ;;  %v493_v3 = vsel %vm484_vm7, %v485_v55, 0.0  ;;  %v314_v59 = vadd.f32 %v872_v56, %v282_v51  ;;  %v1515_v6 = vadd.f32 %v494_v57, %v486_v24 }
  0x77   :  { %v878_v40 = vpop.eup %877  ;;  %v340_v39 = vadd.f32 %v876_v60, %v308_v47  ;;  %v1517_v1 = vadd.f32 %v494_v57, %v487_v8  ;;  %v1521_v7 = vadd.f32 %v494_v57, %v488_v19  ;;  %v1523_v9 = vadd.f32 %v494_v57, %v489_v23 }
  0x78   :  { %v880_v52 = vpop.eup %879  ;;  %v341_v18 = vadd.f32 %v878_v40, %v309_v5  ;;  %889 = vlog2.f32 %v339_v48  ;;  %v1525_v55 = vadd.f32 %v494_v57, %v490_v43  ;;  %vm529_vm8 = vcmp.eq.s32.totalorder %v1968_v49, 3 }
  0x79   :  { %v882_v50 = vpop.eup %881  ;;  %v342_v34 = vadd.f32 %v880_v52, %v310_v41  ;;  %891 = vlog2.f32 %v340_v39  ;;  %vm530_vm9 = vcmp.eq.s32.totalorder %v1064_v11, 3  ;;  %vm531_vm10 = vcmp.eq.s32.totalorder %v1076_v17, 3 }
  0x7a   :  { %v884_v51 = vpop.eup %883  ;;  %v343_v47 = vadd.f32 %v882_v50, %v311_v44  ;;  %893 = vlog2.f32 %v341_v18  ;;  %vm532_vm11 = vcmp.eq.s32.totalorder %v1971_v35, 3  ;;  %v537_v24 = vstv %s1496_s30 }
  0x7b   :  { %v886_v5 = vpop.eup %885  ;;  %v344_v56 = vadd.f32 %v884_v51, %v312_v28  ;;  %895 = vlog2.f32 %v342_v34  ;;  %vm533_vm12 = vcmp.eq.s32.totalorder %v1972_v63, 3  ;;  %vm534_vm13 = vcmp.eq.s32.totalorder %v1973_v38, 3 }
  0x7c   :  { %v888_v41 = vpop.eup %887  ;;  %v345_v8 = vadd.f32 %v886_v5, %v313_v32  ;;  %897 = vlog2.f32 %v343_v47  ;;  %vm535_vm14 = vcmp.eq.s32.totalorder %v1974_v15, 3  ;;  %vm536_vm15 = vcmp.eq.s32.totalorder %v1975_v26, 3 }
  0x7d   :  { %v346_v44 = vadd.f32 %v888_v41, %v314_v59  ;;  %899 = vlog2.f32 %v344_v56  ;;  %v538_v19 = vsel %vm529_vm8, %v537_v24, 0.0  ;;  %v539_v13 = vsel %vm530_vm9, %v537_v24, 0.0 }
  0x7e   :  { %901 = vlog2.f32 %v345_v8  ;;  %v540_v28 = vsel %vm531_vm10, %v537_v24, 0.0  ;;  %v541_v23 = vsel %vm532_vm11, %v537_v24, 0.0  ;;  %v542_v43 = vsel %vm533_vm12, %v537_v24, 0.0 }
  0x7f   :  { %903 = vlog2.f32 %v346_v44  ;;  %v546_v60 = vstv %s1519_s4  ;;  %v1549_v32 = vadd.f32 %v494_v57, %v491_v45  ;;  %v1551_v48 = vadd.f32 %v494_v57, %v492_v27 }
  0x80   :  { %v1553_v40 = vadd.f32 %v494_v57, %v493_v3  ;;  %v543_v59 = vsel %vm534_vm13, %v537_v24, 0.0  ;;  %v544_v39 = vsel %vm535_vm14, %v537_v24, 0.0  ;;  %v545_v52 = vsel %vm536_vm15, %v537_v24, 0.0 }
  0x81   :  { %v1557_v18 = vadd.f32 %v546_v60, %v538_v19  ;;  %vm581_vm0 = vcmp.eq.s32.totalorder %v1968_v49, 4  ;;  %v1560_v50 = vadd.f32 %v546_v60, %v539_v13  ;;  %v1562_v34 = vadd.f32 %v546_v60, %v540_v28 }
  0x82   :  { %v1564_v51 = vadd.f32 %v546_v60, %v541_v23  ;;  %v1566_v45 = vadd.f32 %v546_v60, %v542_v43  ;;  %v1568_v27 = vadd.f32 %v546_v60, %v543_v59  ;;  %vm582_vm1 = vcmp.eq.s32.totalorder %v1064_v11, 4 }
  0x83   :  { %vm583_vm2 = vcmp.eq.s32.totalorder %v1076_v17, 4  ;;  %v589_v57 = vstv %s1532_s5  ;;  %v1573_v3 = vadd.f32 %v546_v60, %v544_v39  ;;  %vm584_vm3 = vcmp.eq.s32.totalorder %v1971_v35, 4 }
  0x84   :  { %vm585_vm4 = vcmp.eq.s32.totalorder %v1972_v63, 4  ;;  %vm586_vm5 = vcmp.eq.s32.totalorder %v1973_v38, 4  ;;  %v1578_v5 = vadd.f32 %v546_v60, %v545_v52  ;;  %vm587_vm6 = vcmp.eq.s32.totalorder %v1974_v15, 4 }
  0x85   :  { %1976 = vst [vmem:[#allocation51_spill] sm:$0xff] %v1573_v3  ;;  %v890_v47 = vpop.eup %889  ;;  %vm588_vm7 = vcmp.eq.s32.totalorder %v1975_v26, 4  ;;  %v590_v11 = vsel %vm581_vm0, %v589_v57, 0.0  ;;  %v591_v24 = vsel %vm582_vm1, %v589_v57, 0.0  ;;  %v592_v41 = vsel %vm583_vm2, %v589_v57, 0.0 }
  0x86   :  { %1977 = vst [vmem:[#allocation52_spill] sm:$0xff] %v1578_v5  ;;  %v892_v17 = vpop.eup %891  ;;  %v348_v56 = vmul.f32 0.6931472, %v890_v47  ;;  %v1585_v8 = vstv %s1544_s6  ;;  %v593_v44 = vsel %vm584_vm3, %v589_v57, 0.0  ;;  %v594_v38 = vsel %vm585_vm4, %v589_v57, 0.0 }
  0x87   :  { %v894_v35 = vpop.eup %893  ;;  %v350_v63 = vmul.f32 0.6931472, %v892_v17  ;;  %v595_v19 = vsel %vm586_vm5, %v589_v57, 0.0  ;;  %v596_v49 = vsel %vm587_vm6, %v589_v57, 0.0  ;;  %v1594_v43 = vsel %vm588_vm7, %v589_v57, 0.0 }
  0x88   :  { %v896_v13 = vpop.eup %895  ;;  %v352_v28 = vmul.f32 0.6931472, %v894_v35  ;;  %v1588_v23 = vadd.f32 %v348_v56, %v1205_v61  ;;  %1978 = vst [vmem:[#allocation53_spill] sm:$0xff] %v1594_v43  ;;  %v1600_v52 = vadd.f32 %v1585_v8, %v590_v11  ;;  %v1603_v47 = vadd.f32 %v1585_v8, %v591_v24  ;;  %v1981_v56 = vld [vmem:[#allocation14_spill] sm:$0xff] }
  0x89   :  { %v898_v60 = vpop.eup %897  ;;  %v354_v59 = vmul.f32 0.6931472, %v896_v13  ;;  %v1597_v39 = vadd.f32 %v350_v63, %v1208_v62  ;;  %v1611_v57 = vadd.f32 %v1585_v8, %v592_v41  ;;  %v1617_v11 = vadd.f32 %v1585_v8, %v593_v44  ;;  %v1987_v44 = vld [vmem:[#allocation23_spill] sm:$0xff]  ;;  %v2000_v43 = vld [vmem:[#allocation30_spill] sm:$0xff] }
  0x8a   :  { %1979 = vst [vmem:[#allocation54_spill] sm:$0xff] %v1600_v52  ;;  %1980 = vst [vmem:[#allocation55_spill] sm:$0xff] %v1603_v47  ;;  %v900_v61 = vpop.eup %899  ;;  %v356_v17 = vmul.f32 0.6931472, %v898_v60  ;;  %v1606_v15 = vadd.f32 %v352_v28, %v1211_v16  ;;  %v399_v26 = vsub.f32 %v1588_v23, %v1981_v56  ;;  %v1620_v24 = vadd.f32 %v1585_v8, %v594_v38  ;;  %v1985_v60 = vld [vmem:[#allocation15_spill] sm:$0xff]  ;;  %v1988_v38 = vld [vmem:[#allocation24_spill] sm:$0xff] }
  0x8b   :  { %1982 = vst [vmem:[#allocation56_spill] sm:$0xff] %v1611_v57  ;;  %v902_v35 = vpop.eup %901  ;;  %v358_v62 = vmul.f32 0.6931472, %v900_v61  ;;  %v1614_v63 = vadd.f32 %v354_v59, %v1221_v22  ;;  %1983 = vst [vmem:[#allocation57_spill] sm:$0xff] %v1617_v11  ;;  %v400_v41 = vsub.f32 %v1597_v39, %v1985_v60  ;;  %v1628_v56 = vadd.f32 %v1585_v8, %v595_v19  ;;  %v1990_v19 = vld [vmem:[#allocation25_spill] sm:$0xff]  ;;  %v1993_v11 = vld [vmem:[#allocation19_spill] sm:$0xff] }
  0x8c   :  { %1984 = vst [vmem:[#allocation59_spill] sm:$0xff] %v1620_v24  ;;  %v904_v13 = vpop.eup %903  ;;  %v360_v16 = vmul.f32 0.6931472, %v902_v35  ;;  %v1623_v28 = vadd.f32 %v356_v17, %v1224_v21  ;;  %v451_v59 = vsub.f32 %v1588_v23, %v1987_v44  ;;  %v452_v24 = vsub.f32 %v1597_v39, %v1988_v38  ;;  %v1989_v21 = vld [vmem:[#allocation16_spill] sm:$0xff]  ;;  %v1996_v57 = vld [vmem:[#allocation27_spill] sm:$0xff]  ;;  %v1999_v52 = vld [vmem:[#allocation29_spill] sm:$0xff] }
  0x8d   :  { %1986 = vst [vmem:[#allocation60_spill] sm:$0xff] %v1628_v56  ;;  %v362_v61 = vmul.f32 0.6931472, %v904_v13  ;;  %v1631_v22 = vadd.f32 %v358_v62, %v1227_v25  ;;  %v401_v17 = vsub.f32 %v1606_v15, %v1989_v21  ;;  %v407_v60 = vmul.f32 %v399_v26, %v1399_v2  ;;  %v1991_v62 = vld [vmem:[#allocation17_spill] sm:$0xff]  ;;  %v1992_v56 = vld [vmem:[#allocation18_spill] sm:$0xff]  ;;  %v1998_v47 = vld [vmem:[#allocation28_spill] sm:$0xff] }
  0x8e   :  { %v1638_v35 = vadd.f32 %v360_v16, %v1236_v37  ;;  %v453_v13 = vsub.f32 %v1606_v15, %v1990_v19  ;;  %v402_v44 = vsub.f32 %v1614_v63, %v1991_v62  ;;  %v403_v38 = vsub.f32 %v1623_v28, %v1992_v56  ;;  %v1994_v16 = vld [vmem:[#allocation20_spill] sm:$0xff]  ;;  %v1995_v26 = vld [vmem:[#allocation26_spill] sm:$0xff] }
  0x8f   :  { %v1646_v25 = vadd.f32 %v362_v61, %v1239_v36  ;;  %v404_v37 = vsub.f32 %v1631_v22, %v1993_v11  ;;  %v408_v2 = vmul.f32 %v400_v41, %v1403_v30  ;;  %v454_v19 = vsub.f32 %v1614_v63, %v1995_v26  ;;  %v1997_v61 = vld [vmem:[#allocation22_spill] sm:$0xff] }
  0x90   :  { %v405_v21 = vsub.f32 %v1638_v35, %v1994_v16  ;;  %v455_v36 = vsub.f32 %v1623_v28, %v1996_v57  ;;  %v456_v56 = vsub.f32 %v1631_v22, %v1998_v47  ;;  %v457_v11 = vsub.f32 %v1638_v35, %v1999_v52 }
  0x91   :  { %v406_v62 = vsub.f32 %v1646_v25, %v1997_v61  ;;  %v458_v16 = vsub.f32 %v1646_v25, %v2000_v43  ;;  %v409_v30 = vmul.f32 %v401_v17, %v1407_v12  ;;  %v459_v41 = vmul.f32 %v451_v59, %v1469_v33  ;;  %v2001_v59 = vld [vmem:[#allocation32_spill] sm:$0xff]  ;;  %v2002_v17 = vld [vmem:[#allocation33_spill] sm:$0xff] }
  0x92   :  { %v460_v26 = vmul.f32 %v452_v24, %v1473_v29  ;;  %v461_v57 = vmul.f32 %v453_v13, %v1475_v54  ;;  %v410_v5 = vmul.f32 %v402_v44, %v1411_v58  ;;  %v411_v61 = vmul.f32 %v403_v38, %v1415_v14  ;;  %v2004_v13 = vld [vmem:[#allocation36_spill] sm:$0xff]  ;;  %v2006_v44 = vld [vmem:[#allocation38_spill] sm:$0xff] }
  0x93   :  { %v412_v47 = vmul.f32 %v404_v37, %v1422_v4  ;;  %v1677_v3 = vadd.f32 %v1585_v8, %v596_v49  ;;  %v413_v52 = vmul.f32 %v405_v21, %v1426_v31  ;;  %v414_v43 = vmul.f32 %v406_v62, %v1431_v46  ;;  %v2003_v46 = vld [vmem:[#allocation34_spill] sm:$0xff]  ;;  %v2008_v37 = vld [vmem:[#allocation41_spill] sm:$0xff] }
  0x94   :  { %v462_v12 = vmul.f32 %v454_v19, %v1478_v42  ;;  %v463_v33 = vmul.f32 %v455_v36, %v1480_v53  ;;  %v464_v29 = vmul.f32 %v456_v56, %v1482_v10  ;;  %v465_v54 = vmul.f32 %v457_v11, %v1484_v0  ;;  %v2005_v10 = vld [vmem:[#allocation37_spill] sm:$0xff] }
  0x95   :  { %v466_v58 = vmul.f32 %v458_v16, %v1486_v20  ;;  %v467_v14 = vadd.f32 %v459_v41, %v407_v60  ;;  %v468_v24 = vadd.f32 %v460_v26, %v408_v2  ;;  %v469_v4 = vadd.f32 %v461_v57, %v409_v30  ;;  %v2007_v60 = vld [vmem:[#allocation40_spill] sm:$0xff] }
  0x96   :  { %v503_v49 = vsub.f32 %v1588_v23, %v2001_v59  ;;  %v504_v31 = vsub.f32 %v1597_v39, %v2002_v17  ;;  %v505_v42 = vsub.f32 %v1606_v15, %v2003_v46  ;;  %v506_v53 = vsub.f32 %v1614_v63, %v2004_v13 }
  0x97   :  { %v507_v0 = vsub.f32 %v1623_v28, %v2005_v10  ;;  %v508_v20 = vsub.f32 %v1631_v22, %v2006_v44  ;;  %v509_v38 = vsub.f32 %v1638_v35, %v2007_v60  ;;  %v510_v21 = vsub.f32 %v1646_v25, %v2008_v37  ;;  %v1730_v44 = vld [vmem:[#allocation7] sm:$0xff] }
  0x98   :  { %v511_v2 = vmul.f32 %v503_v49, %v1515_v6  ;;  %v512_v19 = vmul.f32 %v504_v31, %v1517_v1  ;;  %v470_v36 = vadd.f32 %v462_v12, %v410_v5  ;;  %v471_v62 = vadd.f32 %v463_v33, %v411_v61  ;;  %v905_v5 = vld [vmem:[#allocation6 + $0xc0] sm:$0xff]  ;;  %v2013_v12 = vld [vmem:[#allocation47_spill] sm:$0xff]  ;;  %v2014_v33 = vld [vmem:[#allocation48_spill] sm:$0xff] }
  0x99   :  { %v472_v56 = vadd.f32 %v464_v29, %v412_v47  ;;  %v513_v11 = vmul.f32 %v505_v42, %v1521_v7  ;;  %v473_v16 = vadd.f32 %v465_v54, %v413_v52  ;;  %v474_v30 = vadd.f32 %v466_v58, %v414_v43  ;;  %v2009_v47 = vld [vmem:[#allocation43_spill] sm:$0xff]  ;;  %v2010_v52 = vld [vmem:[#allocation44_spill] sm:$0xff]  ;;  %v2011_v43 = vld [vmem:[#allocation45_spill] sm:$0xff] }
  0x9a   :  { %v514_v41 = vmul.f32 %v506_v53, %v1523_v9  ;;  %v515_v26 = vmul.f32 %v507_v0, %v1525_v55  ;;  %v516_v57 = vmul.f32 %v508_v20, %v1549_v32  ;;  %v517_v59 = vmul.f32 %v509_v38, %v1551_v48  ;;  %v2012_v32 = vld [vmem:[#allocation46_spill] sm:$0xff]  ;;  %v2017_v38 = vld [vmem:[#allocation52_spill] sm:$0xff] }
  0x9b   :  { %v518_v17 = vmul.f32 %v510_v21, %v1553_v40  ;;  %v519_v6 = vadd.f32 %v511_v2, %v467_v14  ;;  %v520_v49 = vadd.f32 %v512_v19, %v468_v24  ;;  %v521_v1 = vadd.f32 %v513_v11, %v469_v4  ;;  %v2015_v54 = vld [vmem:[#allocation50_spill] sm:$0xff]  ;;  %v908_v19 = vld [vmem:[#allocation6 + $0x100] sm:$0xff] }
  0x9c   :  { %v555_v61 = vsub.f32 %v1588_v23, %v905_v5  ;;  %v556_v7 = vsub.f32 %v1597_v39, %v2009_v47  ;;  %v557_v9 = vsub.f32 %v1606_v15, %v2010_v52  ;;  %v558_v55 = vsub.f32 %v1614_v63, %v2011_v43  ;;  %v1733_v20 = vld [vmem:[#allocation7 + $0x8] sm:$0xff] }
  0x9d   :  { %v559_v48 = vsub.f32 %v1623_v28, %v2012_v32  ;;  %v560_v40 = vsub.f32 %v1631_v22, %v2013_v12  ;;  %v561_v29 = vsub.f32 %v1638_v35, %v2014_v33  ;;  %v562_v58 = vsub.f32 %v1646_v25, %v2015_v54  ;;  %v2022_v12 = vld [vmem:[#allocation57_spill] sm:$0xff]  ;;  %v2023_v33 = vld [vmem:[#allocation59_spill] sm:$0xff]  ;;  %v2024_v54 = vld [vmem:[#allocation60_spill] sm:$0xff] }
  0x9e   :  { %v563_v14 = vmul.f32 %v555_v61, %v1557_v18  ;;  %v564_v24 = vmul.f32 %v556_v7, %v1560_v50  ;;  %v522_v4 = vadd.f32 %v514_v41, %v470_v36  ;;  %v523_v31 = vadd.f32 %v515_v26, %v471_v62  ;;  %v2016_v50 = vld [vmem:[#allocation51_spill] sm:$0xff]  ;;  %v909_v62 = vld [vmem:[#allocation6 + $0x108] sm:$0xff]  ;;  %v912_v41 = vld [vmem:[#allocation6 + $0x120] sm:$0xff] }
  0x9f   :  { %v524_v46 = vadd.f32 %v516_v57, %v472_v56  ;;  %v565_v42 = vmul.f32 %v557_v9, %v1562_v34  ;;  %v525_v13 = vadd.f32 %v517_v59, %v473_v16  ;;  %v526_v53 = vadd.f32 %v518_v17, %v474_v30  ;;  %v910_v56 = vld [vmem:[#allocation6 + $0x110] sm:$0xff]  ;;  %v911_v16 = vld [vmem:[#allocation6 + $0x118] sm:$0xff]  ;;  %v913_v57 = vld [vmem:[#allocation6 + $0x128] sm:$0xff] }
  0xa0   :  { %v566_v10 = vmul.f32 %v558_v55, %v1564_v51  ;;  %v567_v0 = vmul.f32 %v559_v48, %v1566_v45  ;;  %vm633_vm8 = vcmp.eq.s32.totalorder %v1730_v44, 5  ;;  %vm634_vm9 = vcmp.eq.s32.totalorder %v1733_v20, 5  ;;  %v2018_v45 = vld [vmem:[#allocation53_spill] sm:$0xff]  ;;  %v914_v59 = vld [vmem:[#allocation6 + $0x130] sm:$0xff]  ;;  %v2021_v9 = vld [vmem:[#allocation56_spill] sm:$0xff] }
  0xa1   :  { %v568_v18 = vmul.f32 %v560_v40, %v1568_v27  ;;  %v569_v60 = vmul.f32 %v561_v29, %v2016_v50  ;;  %v570_v34 = vmul.f32 %v562_v58, %v2017_v38  ;;  %v571_v37 = vadd.f32 %v563_v14, %v519_v6  ;;  %v915_v6 = vld [vmem:[#allocation6 + $0x138] sm:$0xff]  ;;  %v2020_v7 = vld [vmem:[#allocation55_spill] sm:$0xff] }
  0xa2   :  { %v572_v51 = vadd.f32 %v564_v24, %v520_v49  ;;  %v573_v21 = vadd.f32 %v565_v42, %v521_v1  ;;  %v606_v2 = vadd.f32 %v1585_v8, %v2018_v45  ;;  %v607_v36 = vsub.f32 %v1588_v23, %v908_v19  ;;  %v2019_v1 = vld [vmem:[#allocation54_spill] sm:$0xff]  ;;  %v922_v19 = vld [vmem:[#allocation6 + $0x140] sm:$0xff] }
  0xa3   :  { %v608_v27 = vsub.f32 %v1597_v39, %v909_v62  ;;  %v609_v11 = vsub.f32 %v1606_v15, %v910_v56  ;;  %v610_v30 = vsub.f32 %v1614_v63, %v911_v16  ;;  %v611_v26 = vsub.f32 %v1623_v28, %v912_v41 }
  0xa4   :  { %v612_v8 = vsub.f32 %v1631_v22, %v913_v57  ;;  %v613_v17 = vsub.f32 %v1638_v35, %v914_v59  ;;  %v614_v49 = vsub.f32 %v1646_v25, %v915_v6  ;;  %v615_v5 = vmul.f32 %v607_v36, %v2019_v1  ;;  %v923_v57 = vld [vmem:[#allocation6 + $0x148] sm:$0xff]  ;;  %v924_v59 = vld [vmem:[#allocation6 + $0x150] sm:$0xff]  ;;  %v925_v6 = vld [vmem:[#allocation6 + $0x158] sm:$0xff] }
  0xa5   :  { %v574_v61 = vadd.f32 %v566_v10, %v522_v4  ;;  %v575_v47 = vadd.f32 %v567_v0, %v523_v31  ;;  %v616_v52 = vmul.f32 %v608_v27, %v2020_v7  ;;  %v617_v43 = vmul.f32 %v609_v11, %v2021_v9  ;;  %v1783_v10 = vld [vmem:[#allocation7 + $0x30] sm:$0xff] }
  0xa6   :  { %v1756_v55 = vadd.f32 %v568_v18, %v524_v46  ;;  %v1758_v32 = vadd.f32 %v569_v60, %v525_v13  ;;  %v1760_v48 = vadd.f32 %v570_v34, %v526_v53  ;;  %v618_v40 = vmul.f32 %v610_v30, %v2022_v12  ;;  %v1770_v46 = vld [vmem:[#allocation7 + $0x10] sm:$0xff]  ;;  %v1774_v13 = vld [vmem:[#allocation7 + $0x18] sm:$0xff]  ;;  %v1777_v53 = vld [vmem:[#allocation7 + $0x20] sm:$0xff] }
  0xa7   :  { %v619_v29 = vmul.f32 %v611_v26, %v2023_v33  ;;  %v620_v58 = vmul.f32 %v612_v8, %v2024_v54  ;;  %v1766_v14 = vmul.f32 %v613_v17, %v1677_v3  ;;  %v1768_v24 = vmul.f32 %v614_v49, %v606_v2  ;;  %v1780_v3 = vld [vmem:[#allocation7 + $0x28] sm:$0xff]  ;;  %v1788_v18 = vld [vmem:[#allocation7 + $0x38] sm:$0xff]  ;;  %v928_v7 = vld [vmem:[#allocation6 + $0x170] sm:$0xff] }
  0xa8   :  { %v623_v4 = vadd.f32 %v615_v5, %v571_v37  ;;  %v624_v31 = vadd.f32 %v616_v52, %v572_v51  ;;  %v625_v42 = vadd.f32 %v617_v43, %v573_v21  ;;  %vm635_vm10 = vcmp.eq.s32.totalorder %v1770_v46, 5 }
  0xa9   :  { %vm62_vm11 = vcmp.ne.s32.totalorder %v1730_v44, 4294967295  ;;  %vm636_vm12 = vcmp.eq.s32.totalorder %v1774_v13, 5  ;;  %vm637_vm13 = vcmp.eq.s32.totalorder %v1777_v53, 5  ;;  %vm638_vm14 = vcmp.eq.s32.totalorder %v1780_v3, 5 }
  0xaa   :  { %vm639_vm15 = vcmp.eq.s32.totalorder %v1783_v10, 5  ;;  %vm63_vm0 = vcmp.ne.s32.totalorder %v1733_v20, 4294967295  ;;  %vm64_vm1 = vcmp.ne.s32.totalorder %v1770_v46, 4294967295  ;;  %v626_v0 = vadd.f32 %v618_v40, %v574_v61  ;;  %v927_v61 = vld [vmem:[#allocation6 + $0x168] sm:$0xff] }
  0xab   :  { %vm640_vm2 = vcmp.eq.s32.totalorder %v1788_v18, 5  ;;  %v641_v50 = vstv %s1744_s8  ;;  %v650_v60 = vstv %s1739_s7  ;;  %v659_v36 = vsub.f32 %v1588_v23, %v922_v19  ;;  %v926_v23 = vld [vmem:[#allocation6 + $0x160] sm:$0xff] }
  0xac   :  { %v642_v38 = vsel %vm633_vm8, %v641_v50, 0.0  ;;  %v643_v34 = vsel %vm634_vm9, %v641_v50, 0.0  ;;  %v644_v37 = vsel %vm635_vm10, %v641_v50, 0.0  ;;  %v645_v51 = vsel %vm636_vm12, %v641_v50, 0.0 }
  0xad   :  { %v646_v21 = vsel %vm637_vm13, %v641_v50, 0.0  ;;  %v647_v45 = vsel %vm638_vm14, %v641_v50, 0.0  ;;  %v648_v2 = vsel %vm639_vm15, %v641_v50, 0.0  ;;  %v651_v62 = vadd.f32 %v650_v60, %v642_v38 }
  0xae   :  { %v652_v27 = vadd.f32 %v650_v60, %v643_v34  ;;  %v653_v56 = vadd.f32 %v650_v60, %v644_v37  ;;  %v654_v11 = vadd.f32 %v650_v60, %v645_v51  ;;  %v627_v16 = vadd.f32 %v619_v29, %v575_v47  ;;  %v929_v29 = vld [vmem:[#allocation6 + $0x178] sm:$0xff] }
  0xaf   :  { %v649_v30 = vsel %vm640_vm2, %v641_v50, 0.0  ;;  %v655_v41 = vadd.f32 %v650_v60, %v646_v21  ;;  %v656_v26 = vadd.f32 %v650_v60, %v647_v45  ;;  %v660_v8 = vsub.f32 %v1597_v39, %v923_v57 }
  0xb0   :  { %v661_v17 = vsub.f32 %v1606_v15, %v924_v59  ;;  %v662_v49 = vsub.f32 %v1614_v63, %v925_v6  ;;  %v663_v1 = vsub.f32 %v1623_v28, %v926_v23  ;;  %v657_v5 = vadd.f32 %v650_v60, %v648_v2 }
  0xb1   :  { %v664_v47 = vsub.f32 %v1631_v22, %v927_v61  ;;  %v665_v52 = vsub.f32 %v1638_v35, %v928_v7  ;;  %v667_v9 = vmul.f32 %v659_v36, %v651_v62  ;;  %v668_v43 = vmul.f32 %v660_v8, %v652_v27 }
  0xb2   :  { %v669_v12 = vmul.f32 %v661_v17, %v653_v56  ;;  %v670_v39 = vmul.f32 %v662_v49, %v654_v11  ;;  %v671_v40 = vmul.f32 %v663_v1, %v655_v41  ;;  %v628_v15 = vadd.f32 %v620_v58, %v1756_v55 }
  0xb3   :  { %v658_v33 = vadd.f32 %v650_v60, %v649_v30  ;;  %v666_v63 = vsub.f32 %v1646_v25, %v929_v29  ;;  %v675_v54 = vadd.f32 %v667_v9, %v623_v4  ;;  %v672_v28 = vmul.f32 %v664_v47, %v656_v26 }
  0xb4   :  { %v676_v50 = vadd.f32 %v668_v43, %v624_v31  ;;  %v677_v38 = vadd.f32 %v669_v12, %v625_v42  ;;  %v678_v34 = vadd.f32 %v670_v39, %v626_v0  ;;  %vm65_vm3 = vcmp.ne.s32.totalorder %v1774_v13, 4294967295 }
  0xb5   :  { %v629_v22 = vadd.f32 %v1766_v14, %v1758_v32  ;;  %v683_v35 = vsel %vm62_vm11, %v675_v54, 0.0  ;;  %v673_v37 = vmul.f32 %v665_v52, %v657_v5  ;;  %v679_v51 = vadd.f32 %v671_v40, %v627_v16 }
  0xb6   :  { %v684_v55 = vsel %vm63_vm0, %v676_v50, 0.0  ;;  %v685_v25 = vsel %vm64_vm1, %v677_v38, 0.0  ;;  %vm66_vm4 = vcmp.ne.s32.totalorder %v1777_v53, 4294967295  ;;  %v630_v58 = vadd.f32 %v1768_v24, %v1760_v48 }
  0xb7   :  { %v691_v4 = vadd.f32 %v684_v55, %v683_v35  ;;  %v674_v31 = vmul.f32 %v666_v63, %v658_v33  ;;  %v680_v42 = vadd.f32 %v672_v28, %v628_v15  ;;  %v686_v32 = vsel %vm65_vm3, %v678_v34, 0.0 }
  0xb8   :  { %vm67_vm5 = vcmp.ne.s32.totalorder %v1780_v3, 4294967295  ;;  %v1011_v0 = vmov 0.0   ;;  %v681_v45 = vadd.f32 %v673_v37, %v629_v22  ;;  %v687_v48 = vsel %vm66_vm4, %v679_v51, 0.0 }
  0xb9   :  { %v692_v14 = vadd.f32 %v691_v4, %v685_v25  ;;  %v774_v60 = vsel %vm62_vm11, 1.0, %v1011_v0  ;;  %v775_v21 = vsel %vm63_vm0, 1.0, %v1011_v0  ;;  %v776_v24 = vsel %vm64_vm1, 1.0, %v1011_v0 }
  0xba   :  { %vm68_vm6 = vcmp.ne.s32.totalorder %v1783_v10, 4294967295  ;;  %v723_v19 = vadd.f32 %v775_v21, %v774_v60  ;;  %v682_v36 = vadd.f32 %v674_v31, %v630_v58  ;;  %v688_v62 = vsel %vm67_vm5, %v680_v42, 0.0 }
  0xbb   :  { %v693_v2 = vadd.f32 %v692_v14, %v686_v32  ;;  %v777_v44 = vsel %vm65_vm3, 1.0, %v1011_v0  ;;  %vm69_vm7 = vcmp.ne.s32.totalorder %v1788_v18, 4294967295  ;;  %v689_v56 = vsel %vm68_vm6, %v681_v45, 0.0 }
  0xbc   :  { %v724_v27 = vadd.f32 %v776_v24, %v723_v19  ;;  %v778_v46 = vsel %vm66_vm4, 1.0, %v1011_v0  ;;  %v690_v30 = vsel %vm69_vm7, %v682_v36, 0.0  ;;  %v779_v41 = vsel %vm67_vm5, 1.0, %v1011_v0 }
  0xbd   :  { %v694_v20 = vadd.f32 %v693_v2, %v687_v48  ;;  %v780_v13 = vsel %vm68_vm6, 1.0, %v1011_v0  ;;  %v781_v59 = vsel %vm69_vm7, 1.0, %v1011_v0  ;;  %v739_v39 = vlaneseq }
  0xbe   :  { %v725_v16 = vadd.f32 %v777_v44, %v724_v27 }
  0xbf   :  { %v695_v11 = vadd.f32 %v694_v20, %v688_v62  ;;  %v740_v40 = vshrl.u32 %v739_v39, 7 }
  0xc0   :  { %v726_v57 = vadd.f32 %v778_v46, %v725_v16 }
  0xc1   :  { %v696_v26 = vadd.f32 %v695_v11, %v689_v56  ;;  %vm741_vm8 = vcmp.eq.s32.totalorder %v740_v40, 0 }
  0xc2   :  { %v727_v8 = vadd.f32 %v779_v41, %v726_v57 }
  0xc3   :  { %v697_v18 = vadd.f32 %v696_v26, %v690_v30 }
  0xc4   :  { %v728_v17 = vadd.f32 %v780_v13, %v727_v8 }
  0xc5   :  { %698 = vadd.xlane.f32.xlu0 %v697_v18 }
  0xc6   :  { %v729_v6 = vadd.f32 %v781_v59, %v728_v17 }
  0xc9   :  { %730 = vadd.xlane.f32.xlu0 %v729_v6 }
 0x14e   :  { %v699_v53 = vpop.xlane.xlu0 %698 }
 0x14f   :  { %v700_v49 = vrot.slane %v699_v53, 4 }
 0x151   :  { %v701_v23 = vadd.f32 %v700_v49, %v699_v53 }
 0x152   :  { %v731_v1 = vpop.xlane.xlu0 %730 }
 0x153   :  { %v702_v5 = vrot.slane %v701_v23, 2  ;;  %v732_v61 = vrot.slane %v731_v1, 4 }
 0x155   :  { %v703_v3 = vadd.f32 %v702_v5, %v701_v23  ;;  %v733_v47 = vadd.f32 %v732_v61, %v731_v1 }
 0x157   :  { %v704_v7 = vrot.slane %v703_v3, 1  ;;  %v734_v52 = vrot.slane %v733_v47, 2 }
 0x159   :  { %v705_v9 = vadd.f32 %v704_v7, %v703_v3  ;;  %v735_v10 = vadd.f32 %v734_v52, %v733_v47 }
 0x15b   :  { %782 = vpush %v705_v9  ;;  %v736_v43 = vrot.slane %v735_v10, 1 }
 0x15d   :  { %v737_v12 = vadd.f32 %v736_v43, %v735_v10 }
 0x15f   :  { %784 = vpush %v737_v12 }
 0x18c   :  { %s783_s9 = spop %782 }
 0x18d   :  { %v742_v15 = vstv %s783_s9 }
 0x190   :  { %s785_s12 = spop %784 }
 0x191   :  { %v743_v33 = vstv %s785_s12 }
 0x192   :  { %v744_v29 = vsel %vm741_vm8, %v742_v15, %v743_v33 }
 0x193   :  { %745 = vst [vmem:[#allocation9] sm:$0xff] %v744_v29 }
 0x194   :  { %989 = shalt.err (!%p986_p0)
}
 0x195   :  { %755 = dma.vmem_to_hbm [thread:$0]  %s753_s11, 128, %s1857_s3, [#allocation4]  }
 0x196   :  { %1004 = dma.done.wait [#allocation4], 128  }
 0x197   :  { %1005 = vsyncadd [#allocation4], 4294967168 }
 0x198   :  { %759 = vsyncpa [#allocation3], 1 }
 0x199   :  { %760 = vsyncpa [#allocation8], 1 }
 0x19a   :  { %761 = vsyncpa [#allocation4], 1 }
 0x19b   :  { %762 = vsyncpa [#allocation5], 1 }

</bundles_post_ra>
